<compile_context>
chip_gen: v7x
topology: tpu7x:2x2x1
jax: 0.10.0
libtpu: 0.0.40
codegen_flags: <defaults>
</compile_context>

<pallas_src>
import math

import jax
import jax.numpy as jnp
from jax.experimental import pallas as pl
from jax.experimental.pallas import tpu as pltpu

# ----------------------------- configuration --------------------------------
DIM_MODEL = 32
N_HEAD = 4
HEAD_DIM = DIM_MODEL // N_HEAD
DIM_FF = 64
N_LAYERS = 1
MAX_PEP_LEN = 8
MAX_CHARGE = 5
N_PEAKS = 16
BATCH = 2

# canonical residue alphabet (20 residues, C carbamidomethylated) + blank '_'
_CANONICAL = ["G", "A", "S", "P", "V", "T", "C+57.021", "L", "I", "N",
              "D", "Q", "K", "E", "M", "H", "F", "R", "Y", "W"]
AMINO_ACIDS = _CANONICAL + ["_"]
VOCAB = len(AMINO_ACIDS)            # 21 == vocab_size == final-layer out dim
N_OUT = len(AMINO_ACIDS)            # 21
MASK_IDX = len(AMINO_ACIDS)         # 21 == padding_idx of aa_encoder
AA_EMB_ROWS = len(AMINO_ACIDS) + 1  # 22
V_PAD = 128                         # lane-dense padded score width

NEG_INF = -1e30


# ----------------------------- encoders (glue) -------------------------------
def _encoder_terms(dim_model, min_wavelength, max_wavelength):
    n_sin = dim_model // 2
    n_cos = dim_model - n_sin
    base = min_wavelength / (2.0 * math.pi)
    scale = max_wavelength / min_wavelength
    sin_term = base * scale ** (jnp.arange(n_sin, dtype=jnp.float32) / (n_sin - 1))
    cos_term = base * scale ** (jnp.arange(n_cos, dtype=jnp.float32) / (n_cos - 1))
    return sin_term, cos_term


def mass_encode(x, sin_term, cos_term):
    # x: (..., 1)  ->  (..., dim_model)
    return jnp.concatenate([jnp.sin(x / sin_term), jnp.cos(x / cos_term)], axis=-1)


def pos_encode(x, sin_term, cos_term):
    # x: (B, L, D) -> positional encoding added
    b, l, _ = x.shape
    pos = jnp.arange(l, dtype=jnp.float32)[None, :, None]
    sin_pos = jnp.broadcast_to(jnp.sin(pos / sin_term), (b, l, sin_term.shape[0]))
    cos_pos = jnp.broadcast_to(jnp.cos(pos / cos_term), (b, l, cos_term.shape[0]))
    return jnp.concatenate([sin_pos, cos_pos], axis=-1) + x


# ----------------------------- kernel helpers ---------------------------------
def _layernorm(x, g, b, eps=1e-5):
    mu = jnp.mean(x, axis=-1, keepdims=True)
    var = jnp.mean((x - mu) ** 2, axis=-1, keepdims=True)
    return (x - mu) * jax.lax.rsqrt(var + eps) * g + b


# ----------------------------- Pallas kernel ---------------------------------
def decoder_kernel(tgt_ref, mem_ref, smask_ref, cmask_ref, hsel_ref,
                   w_qkv_ref, w_o_ref, w_ff_ref, bias_ref, w_fin_ref,
                   scores_ref):
    D, F = DIM_MODEL, DIM_FF
    B, L, _ = tgt_ref.shape
    S = mem_ref.shape[1]
    BL, BS = B * L, B * S

    # All activations kept as (B*L, D) / (B*S, D) slabs -> one matmul per op.
    x = tgt_ref[...].reshape(BL, D)
    mem = mem_ref[...].reshape(BS, D)
    smask = smask_ref[...]            # (H*BL, BL) additive (batch-block + pad)
    cmask = cmask_ref[...]            # (H*BL, BS) additive
    hsel = hsel_ref[...]              # (H*BL, D) head-selection 0/1 mask

    fin = w_fin_ref[...]              # (D+1, 128)
    fin_w = fin[0:D, :]
    fin_b = fin[D:D + 1, :]

    def mha(q, k, v, mask_add, w_o, b_o):
        """Merged-head, merged-batch attention.

        q:(BL,D) k,v:(Nk,D) mask_add:(H*BL,Nk). Heads are handled by stacking
        zero-masked copies of q along the row axis -> ONE NT dot_general for
        scores, ONE softmax pass, ONE p@v matmul, then a masked row-block sum
        recombines the per-head contexts already concatenated along lanes.
        """
        q_stack = jnp.concatenate([q] * N_HEAD, axis=0) * hsel         # (H*BL, D)
        s = jax.lax.dot_general(q_stack, k, (((1,), (1,)), ((), ())),
                                preferred_element_type=jnp.float32) + mask_add
        s = s - jnp.max(s, axis=-1, keepdims=True)
        p = jnp.exp(s)
        p = p * pl.reciprocal(jnp.sum(p, axis=-1, keepdims=True), approx=True)
        c = jnp.dot(p, v, preferred_element_type=jnp.float32) * hsel   # (H*BL, D)
        ctx = c[0:BL]
        for h in range(1, N_HEAD):                    # sublane-aligned row blocks
            ctx = ctx + c[h * BL:(h + 1) * BL]
        return jnp.dot(ctx, w_o, preferred_element_type=jnp.float32) + b_o

    # N_LAYERS is tiny/static; for larger configs switch to lax.fori_loop(unroll=True).
    for l in range(N_LAYERS):
        w_sa = w_qkv_ref[2 * l]        # (D, 3D)  [Wq*scale | Wk | Wv]
        w_ca = w_qkv_ref[2 * l + 1]    # (D, 3D)  [Wk | Wv | Wq*scale]
        wo_sa = w_o_ref[2 * l]         # (D, D)
        wo_ca = w_o_ref[2 * l + 1]     # (D, D)
        wff = w_ff_ref[l]              # (D+F, F)
        bv = bias_ref[l]               # (12, 3D) biases + LN params

        # --- self attention + post-LN (torch TransformerDecoderLayer default)
        proj = jnp.dot(x, w_sa, preferred_element_type=jnp.float32) + bv[0:1, :]
        sa = mha(proj[:, 0:D], proj[:, D:2 * D], proj[:, 2 * D:3 * D],
                 smask, wo_sa, bv[2:3, 0:D])
        x = _layernorm(x + sa, bv[4:5, 0:D], bv[5:6, 0:D])

        # --- cross attention + post-LN (K/V from memory, lane-0 aligned slab slice)
        kv = jnp.dot(mem, w_ca[:, 0:2 * D],
                     preferred_element_type=jnp.float32) + bv[1:2, 0:2 * D]
        q = jnp.dot(x, w_ca[:, 2 * D:3 * D],
                    preferred_element_type=jnp.float32) + bv[1:2, 2 * D:3 * D]
        ca = mha(q, kv[:, 0:D], kv[:, D:2 * D], cmask, wo_ca, bv[3:4, 0:D])
        x = _layernorm(x + ca, bv[6:7, 0:D], bv[7:8, 0:D])

        # --- feed forward (ReLU, dropout=0) + post-LN
        f = jnp.maximum(
            jnp.dot(x, wff[0:D, :], preferred_element_type=jnp.float32)
            + bv[10:11, 0:F], 0.0)
        f = jnp.dot(f, wff[D:D + F, 0:D],
                    preferred_element_type=jnp.float32) + bv[11:12, 0:D]
        x = _layernorm(x + f, bv[8:9, 0:D], bv[9:10, 0:D])

        # --- per-layer vocabulary projection: one lane-dense (B*L, 128) store
        scores_ref[l] = jnp.dot(x, fin_w,
                                preferred_element_type=jnp.float32) + fin_b


def _full_spec(shape):
    nd = len(shape)
    return pl.BlockSpec(shape, lambda i, _nd=nd: (0,) * _nd)


def make_decoder_call(B, L, S, D, F, NL):
    BL, BS, HBL = B * L, B * S, N_HEAD * B * L
    in_specs = [
        _full_spec((B, L, D)),                # tgt
        _full_spec((B, S, D)),                # memory
        _full_spec((HBL, BL)),                # self-attn additive mask
        _full_spec((HBL, BS)),                # cross-attn additive mask
        _full_spec((HBL, D)),                 # head-selection 0/1 mask
        _full_spec((2 * NL, D, 3 * D)),       # packed QKV slabs (self / cross)
        _full_spec((2 * NL, D, D)),           # output-projection weights
        _full_spec((NL, D + F, F)),           # packed FF weights
        _full_spec((NL, 12, 3 * D)),          # biases + LN params
        _full_spec((D + 1, V_PAD)),           # padded final projection (+bias row)
    ]
    out_specs = _full_spec((NL, BL, V_PAD))
    out_shape = jax.ShapeDtypeStruct((NL, BL, V_PAD), jnp.float32)
    return pl.pallas_call(
        decoder_kernel,
        grid=(1,),
        in_specs=in_specs,
        out_specs=out_specs,
        out_shape=out_shape,
        compiler_params=pltpu.CompilerParams(dimension_semantics=("arbitrary",)),
    )


# ----------------------------- parameters ------------------------------------
def init_params(key):
    keys = list(jax.random.split(key, 8 + N_LAYERS * 32))
    it = iter(keys)

    def nrm(shape, scale=0.05):
        return (scale * jax.random.normal(next(it), shape)).astype(jnp.float32)

    params = {}
    params["charge_emb"] = nrm((MAX_CHARGE, DIM_MODEL), 1.0)
    aa = nrm((AA_EMB_ROWS, DIM_MODEL), 1.0)
    aa = aa.at[MASK_IDX].set(0.0)            # padding_idx row is zeros in torch
    params["aa_emb"] = aa

    layers = []
    for _ in range(N_LAYERS):
        lyr = {
            "sa_wq": nrm((DIM_MODEL, DIM_MODEL)), "sa_bq": nrm((1, DIM_MODEL)),
            "sa_wk": nrm((DIM_MODEL, DIM_MODEL)), "sa_bk": nrm((1, DIM_MODEL)),
            "sa_wv": nrm((DIM_MODEL, DIM_MODEL)), "sa_bv": nrm((1, DIM_MODEL)),
            "sa_wo": nrm((DIM_MODEL, DIM_MODEL)), "sa_bo": nrm((1, DIM_MODEL)),
            "ca_wq": nrm((DIM_MODEL, DIM_MODEL)), "ca_bq": nrm((1, DIM_MODEL)),
            "ca_wk": nrm((DIM_MODEL, DIM_MODEL)), "ca_bk": nrm((1, DIM_MODEL)),
            "ca_wv": nrm((DIM_MODEL, DIM_MODEL)), "ca_bv": nrm((1, DIM_MODEL)),
            "ca_wo": nrm((DIM_MODEL, DIM_MODEL)), "ca_bo": nrm((1, DIM_MODEL)),
            "n1_g": jnp.ones((1, DIM_MODEL), jnp.float32), "n1_b": jnp.zeros((1, DIM_MODEL), jnp.float32),
            "n2_g": jnp.ones((1, DIM_MODEL), jnp.float32), "n2_b": jnp.zeros((1, DIM_MODEL), jnp.float32),
            "n3_g": jnp.ones((1, DIM_MODEL), jnp.float32), "n3_b": jnp.zeros((1, DIM_MODEL), jnp.float32),
            "ff_w1": nrm((DIM_MODEL, DIM_FF)), "ff_b1": nrm((1, DIM_FF)),
            "ff_w2": nrm((DIM_FF, DIM_MODEL)), "ff_b2": nrm((1, DIM_MODEL)),
        }
        layers.append(lyr)
    params["layers"] = layers
    params["fin_w"] = nrm((DIM_MODEL, N_OUT))
    params["fin_b"] = nrm((1, N_OUT))
    return params


def pack_params(params):
    """Pack per-layer weights into a few dense, lane-friendly slabs."""
    D, F = DIM_MODEL, DIM_FF
    scale = 1.0 / math.sqrt(HEAD_DIM)

    def row(v):
        return jnp.pad(v, ((0, 0), (0, 3 * D - v.shape[1])))

    w_qkv, w_o, w_ff, biases = [], [], [], []
    for lyr in params["layers"]:
        # self slab: [Wq*scale | Wk | Wv]; cross slab: [Wk | Wv | Wq*scale]
        w_qkv.append(jnp.concatenate(
            [lyr["sa_wq"] * scale, lyr["sa_wk"], lyr["sa_wv"]], axis=1))
        w_qkv.append(jnp.concatenate(
            [lyr["ca_wk"], lyr["ca_wv"], lyr["ca_wq"] * scale], axis=1))
        w_o.append(lyr["sa_wo"])
        w_o.append(lyr["ca_wo"])
        # FF slab: rows 0:D = w1 (D,F); rows D:D+F = w2 padded to width F
        w_ff.append(jnp.concatenate(
            [lyr["ff_w1"], jnp.pad(lyr["ff_w2"], ((0, 0), (0, F - D)))], axis=0))
        # bias / LN-param slab (12, 3D)
        b_rows = [
            jnp.concatenate([lyr["sa_bq"] * scale, lyr["sa_bk"], lyr["sa_bv"]], axis=1),
            jnp.concatenate([lyr["ca_bk"], lyr["ca_bv"], lyr["ca_bq"] * scale], axis=1),
            row(lyr["sa_bo"]), row(lyr["ca_bo"]),
            row(lyr["n1_g"]), row(lyr["n1_b"]),
            row(lyr["n2_g"]), row(lyr["n2_b"]),
            row(lyr["n3_g"]), row(lyr["n3_b"]),
            row(lyr["ff_b1"]), row(lyr["ff_b2"]),
        ]
        biases.append(jnp.concatenate(b_rows, axis=0))

    w_qkv = jnp.stack(w_qkv)            # (2*NL, D, 3D)
    w_o = jnp.stack(w_o)                # (2*NL, D, D)
    w_ff = jnp.stack(w_ff)              # (NL, D+F, F)
    biases = jnp.stack(biases)          # (NL, 12, 3D)

    # final projection padded to 128 lanes, bias appended as last row
    fw = jnp.pad(params["fin_w"], ((0, 0), (0, V_PAD - N_OUT)))        # (D, 128)
    fb = jnp.pad(params["fin_b"], ((0, 0), (0, V_PAD - N_OUT)))        # (1, 128)
    w_fin = jnp.concatenate([fw, fb], axis=0)                          # (D+1, 128)
    return w_qkv, w_o, w_ff, biases, w_fin


def make_head_sel(n_q):
    """(H*n_q, D) 0/1 mask selecting, for row-block h, the columns of head h."""
    row_head = jnp.repeat(jnp.arange(N_HEAD), n_q)[:, None]            # (H*n_q, 1)
    col_head = (jnp.arange(DIM_MODEL) // HEAD_DIM)[None, :]            # (1, D)
    return (row_head == col_head).astype(jnp.float32)


def make_attn_masks(tgt_pad, mem_pad):
    """Additive masks in the merged (H*B*L, n_keys) layout used by the kernel.

    Forbids cross-batch attention (batch block mask) and masks padded keys.
    """
    B, L = tgt_pad.shape
    S = mem_pad.shape[1]
    qb = jnp.repeat(jnp.arange(B), L)                     # batch of each query row
    kb_t = jnp.repeat(jnp.arange(B), L)                   # batch of each tgt key
    kb_m = jnp.repeat(jnp.arange(B), S)                   # batch of each memory key
    valid_t = (qb[:, None] == kb_t[None, :]) & (~tgt_pad.reshape(-1))[None, :]
    valid_m = (qb[:, None] == kb_m[None, :]) & (~mem_pad.reshape(-1))[None, :]
    smask = jnp.where(valid_t, 0.0, NEG_INF).astype(jnp.float32)       # (BL, BL)
    cmask = jnp.where(valid_m, 0.0, NEG_INF).astype(jnp.float32)       # (BL, BS)
    return (jnp.tile(smask, (N_HEAD, 1)),                 # (H*BL, BL)
            jnp.tile(cmask, (N_HEAD, 1)))                 # (H*BL, BS)


# ----------------------------- forward (wrapper) ------------------------------
def peptide_decoder_forward(params, precursors, memory, memory_key_padding_mask,
                            prev=None):
    """Mirrors PeptideDecoder.forward with sequences=None (tokens are not used
    in the compute path; they are only returned)."""
    B = precursors.shape[0]
    S = memory.shape[1]

    sin_m, cos_m = _encoder_terms(DIM_MODEL, 0.001, 10000.0)   # MassEncoder
    sin_p, cos_p = _encoder_terms(DIM_MODEL, 1.0, 10000.0)     # PositionalEncoder

    masses = mass_encode(precursors[:, None, 0:1], sin_m, cos_m)            # (B,1,D)
    charges = params["charge_emb"][precursors[:, 1].astype(jnp.int32) - 1]  # (B,D)
    prec_emb = masses + charges[:, None, :]                                 # (B,1,D)
    tgt_rep = jnp.tile(prec_emb, (1, MAX_PEP_LEN, 1))                       # (B,L,D)

    if prev is None:
        prev = jnp.full((B, MAX_PEP_LEN), MASK_IDX, dtype=jnp.int32)
    glat_peaking = params["aa_emb"][prev]                                   # (B,L,D)

    tgt_key_padding_mask = jnp.sum(tgt_rep, axis=2) == 0                    # (B,L) bool
    tgt = pos_encode(glat_peaking, sin_p, cos_p)                            # (B,L,D)

    smask, cmask = make_attn_masks(tgt_key_padding_mask, memory_key_padding_mask)
    hsel = make_head_sel(B * MAX_PEP_LEN)
    w_qkv, w_o, w_ff, biases, w_fin = pack_params(params)

    call = make_decoder_call(B, MAX_PEP_LEN, S, DIM_MODEL, DIM_FF, N_LAYERS)
    scores_pad = call(tgt, memory.astype(jnp.float32), smask, cmask, hsel,
                      w_qkv, w_o, w_ff, biases, w_fin)       # (NL, B*L, 128)
    scores_pad = scores_pad.reshape(N_LAYERS, B, MAX_PEP_LEN, V_PAD)
    output_list = [scores_pad[l, :, :, :N_OUT] for l in range(N_LAYERS)]

    # TODO(synk): string tokenize/detokenize path (sequences is a list of python
    # strings) has no Pallas equivalent; sequences=None path is implemented.
    tokens = jnp.zeros((1, 0), dtype=jnp.int32)
    return output_list[-1], tokens, output_list


# ----------------------------- demo ------------------------------------------
if __name__ == "__main__":
    key = jax.random.PRNGKey(0)
    kp, k1, k2, k3 = jax.random.split(key, 4)

    params = init_params(kp)

    prec_mass = jax.random.uniform(k1, (BATCH,), minval=500.0, maxval=2000.0)
    prec_charge = jnp.array([2.0, 3.0], dtype=jnp.float32)[:BATCH]
    precursors = jnp.stack([prec_mass, prec_charge], axis=1)              # (B, 2)

    memory = jax.random.normal(k2, (BATCH, N_PEAKS, DIM_MODEL), dtype=jnp.float32)
    memory_key_padding_mask = jnp.zeros((BATCH, N_PEAKS), dtype=bool)
    memory_key_padding_mask = memory_key_padding_mask.at[:, N_PEAKS - 2:].set(True)

    prev = jax.random.randint(k3, (BATCH, MAX_PEP_LEN), 0, VOCAB, dtype=jnp.int32)

    scores, tokens, out_list = peptide_decoder_forward(
        params, precursors, memory, memory_key_padding_mask, prev=prev)
    jax.block_until_ready(scores)

    assert scores.shape == (BATCH, MAX_PEP_LEN, N_OUT)
    assert len(out_list) == N_LAYERS
    assert jnp.all(jnp.isfinite(scores))
    print("KERNEL_OK")
</pallas_src>

<mosaic_0001>
module attributes {stable_mosaic.version = 11 : i64} {
  func.func @decoder_kernel(%arg0: i32, %arg1: memref<2x8x32xf32, #tpu.memory_space<vmem>>, %arg2: memref<2x16x32xf32, #tpu.memory_space<vmem>>, %arg3: memref<64x16xf32, #tpu.memory_space<vmem>>, %arg4: memref<64x32xf32, #tpu.memory_space<vmem>>, %arg5: memref<64x32xf32, #tpu.memory_space<vmem>>, %arg6: memref<2x32x96xf32, #tpu.memory_space<vmem>>, %arg7: memref<2x32x32xf32, #tpu.memory_space<vmem>>, %arg8: memref<1x96x64xf32, #tpu.memory_space<vmem>>, %arg9: memref<1x12x96xf32, #tpu.memory_space<vmem>>, %arg10: memref<33x128xf32, #tpu.memory_space<vmem>>, %arg11: memref<1x16x128xf32, #tpu.memory_space<vmem>>) attributes {dimension_semantics = [#tpu.dimension_semantics<arbitrary>], iteration_bounds = array<i64: 1>, scalar_prefetch = 0 : i64, scratch_operands = 0 : i64, tpu.core_type = #tpu.core_type<tc>, window_params = [{pipeline_mode = #tpu.pipeline_mode<synchronous>, transform_indices = @transform_0, window_bounds = array<i64: 2, 8, 32>}, {pipeline_mode = #tpu.pipeline_mode<synchronous>, transform_indices = @transform_1, window_bounds = array<i64: 2, 16, 32>}, {pipeline_mode = #tpu.pipeline_mode<synchronous>, transform_indices = @transform_2, window_bounds = array<i64: 64, 16>}, {pipeline_mode = #tpu.pipeline_mode<synchronous>, transform_indices = @transform_3, window_bounds = array<i64: 64, 32>}, {pipeline_mode = #tpu.pipeline_mode<synchronous>, transform_indices = @transform_4, window_bounds = array<i64: 64, 32>}, {pipeline_mode = #tpu.pipeline_mode<synchronous>, transform_indices = @transform_5, window_bounds = array<i64: 2, 32, 96>}, {pipeline_mode = #tpu.pipeline_mode<synchronous>, transform_indices = @transform_6, window_bounds = array<i64: 2, 32, 32>}, {pipeline_mode = #tpu.pipeline_mode<synchronous>, transform_indices = @transform_7, window_bounds = array<i64: 1, 96, 64>}, {pipeline_mode = #tpu.pipeline_mode<synchronous>, transform_indices = @transform_8, window_bounds = array<i64: 1, 12, 96>}, {pipeline_mode = #tpu.pipeline_mode<synchronous>, transform_indices = @transform_9, window_bounds = array<i64: 33, 128>}, {pipeline_mode = #tpu.pipeline_mode<synchronous>, transform_indices = @transform_10, window_bounds = array<i64: 1, 16, 128>}]} {
    %c0 = arith.constant 0 : index
    %c0_0 = arith.constant 0 : index
    %c0_1 = arith.constant 0 : index
    %0 = vector.load %arg1[%c0, %c0_0, %c0_1] : memref<2x8x32xf32, #tpu.memory_space<vmem>>, vector<2x8x32xf32>
    %1 = vector.shape_cast %0 : vector<2x8x32xf32> to vector<16x32xf32>
    %c0_2 = arith.constant 0 : index
    %c0_3 = arith.constant 0 : index
    %c0_4 = arith.constant 0 : index
    %2 = vector.load %arg2[%c0_2, %c0_3, %c0_4] : memref<2x16x32xf32, #tpu.memory_space<vmem>>, vector<2x16x32xf32>
    %3 = vector.shape_cast %2 : vector<2x16x32xf32> to vector<32x32xf32>
    %c0_5 = arith.constant 0 : index
    %c0_6 = arith.constant 0 : index
    %4 = vector.load %arg3[%c0_5, %c0_6] : memref<64x16xf32, #tpu.memory_space<vmem>>, vector<64x16xf32>
    %c0_7 = arith.constant 0 : index
    %c0_8 = arith.constant 0 : index
    %5 = vector.load %arg4[%c0_7, %c0_8] : memref<64x32xf32, #tpu.memory_space<vmem>>, vector<64x32xf32>
    %c0_9 = arith.constant 0 : index
    %c0_10 = arith.constant 0 : index
    %6 = vector.load %arg5[%c0_9, %c0_10] : memref<64x32xf32, #tpu.memory_space<vmem>>, vector<64x32xf32>
    %c0_11 = arith.constant 0 : index
    %c0_12 = arith.constant 0 : index
    %7 = vector.load %arg10[%c0_11, %c0_12] : memref<33x128xf32, #tpu.memory_space<vmem>>, vector<33x128xf32>
    %8 = vector.extract_strided_slice %7 {offsets = [0, 0], sizes = [32, 128], strides = [1, 1]} : vector<33x128xf32> to vector<32x128xf32>
    %9 = vector.extract_strided_slice %7 {offsets = [32, 0], sizes = [1, 128], strides = [1, 1]} : vector<33x128xf32> to vector<1x128xf32>
    %c0_13 = arith.constant 0 : index
    %c0_14 = arith.constant 0 : index
    %c0_15 = arith.constant 0 : index
    %10 = vector.load %arg6[%c0_13, %c0_14, %c0_15] : memref<2x32x96xf32, #tpu.memory_space<vmem>>, vector<1x32x96xf32>
    %11 = vector.shape_cast %10 : vector<1x32x96xf32> to vector<32x96xf32>
    %c1 = arith.constant 1 : index
    %c0_16 = arith.constant 0 : index
    %c0_17 = arith.constant 0 : index
    %12 = vector.load %arg6[%c1, %c0_16, %c0_17] : memref<2x32x96xf32, #tpu.memory_space<vmem>>, vector<1x32x96xf32>
    %13 = vector.shape_cast %12 : vector<1x32x96xf32> to vector<32x96xf32>
    %c0_18 = arith.constant 0 : index
    %c0_19 = arith.constant 0 : index
    %c0_20 = arith.constant 0 : index
    %14 = vector.load %arg7[%c0_18, %c0_19, %c0_20] : memref<2x32x32xf32, #tpu.memory_space<vmem>>, vector<1x32x32xf32>
    %15 = vector.shape_cast %14 : vector<1x32x32xf32> to vector<32x32xf32>
    %c1_21 = arith.constant 1 : index
    %c0_22 = arith.constant 0 : index
    %c0_23 = arith.constant 0 : index
    %16 = vector.load %arg7[%c1_21, %c0_22, %c0_23] : memref<2x32x32xf32, #tpu.memory_space<vmem>>, vector<1x32x32xf32>
    %17 = vector.shape_cast %16 : vector<1x32x32xf32> to vector<32x32xf32>
    %c0_24 = arith.constant 0 : index
    %c0_25 = arith.constant 0 : index
    %c0_26 = arith.constant 0 : index
    %18 = vector.load %arg8[%c0_24, %c0_25, %c0_26] : memref<1x96x64xf32, #tpu.memory_space<vmem>>, vector<1x96x64xf32>
    %19 = vector.shape_cast %18 : vector<1x96x64xf32> to vector<96x64xf32>
    %c0_27 = arith.constant 0 : index
    %c0_28 = arith.constant 0 : index
    %c0_29 = arith.constant 0 : index
    %20 = vector.load %arg9[%c0_27, %c0_28, %c0_29] : memref<1x12x96xf32, #tpu.memory_space<vmem>>, vector<1x12x96xf32>
    %21 = vector.shape_cast %20 : vector<1x12x96xf32> to vector<12x96xf32>
    %cst = arith.constant dense<0.000000e+00> : vector<16x96xf32>
    %22 = tpu.matmul %1, %11, %cst {dimension_numbers = #tpu.dot_dimension_numbers<[1], [0], [0], [1], [0, 0, 1, 1], [], []>} : vector<16x32xf32>, vector<32x96xf32>, vector<16x96xf32> -> vector<16x96xf32>
    %23 = vector.extract_strided_slice %21 {offsets = [0, 0], sizes = [1, 96], strides = [1, 1]} : vector<12x96xf32> to vector<1x96xf32>
    %24 = vector.broadcast %23 : vector<1x96xf32> to vector<16x96xf32>
    %25 = arith.addf %22, %24 : vector<16x96xf32>
    %26 = vector.extract_strided_slice %25 {offsets = [0, 0], sizes = [16, 32], strides = [1, 1]} : vector<16x96xf32> to vector<16x32xf32>
    %27 = vector.extract_strided_slice %25 {offsets = [0, 32], sizes = [16, 32], strides = [1, 1]} : vector<16x96xf32> to vector<16x32xf32>
    %28 = vector.extract_strided_slice %25 {offsets = [0, 64], sizes = [16, 32], strides = [1, 1]} : vector<16x96xf32> to vector<16x32xf32>
    %29 = vector.extract_strided_slice %21 {offsets = [2, 0], sizes = [1, 32], strides = [1, 1]} : vector<12x96xf32> to vector<1x32xf32>
    %30 = tpu.concatenate %26, %26, %26, %26 in 0 : vector<16x32xf32>, vector<16x32xf32>, vector<16x32xf32>, vector<16x32xf32> -> vector<64x32xf32>
    %31 = arith.mulf %30, %6 : vector<64x32xf32>
    %cst_30 = arith.constant dense<0.000000e+00> : vector<64x16xf32>
    %32 = tpu.matmul %31, %27, %cst_30 {dimension_numbers = #tpu.dot_dimension_numbers<[1], [1], [0], [0], [0, 0, 1, 0], [], []>} : vector<64x32xf32>, vector<16x32xf32>, vector<64x16xf32> -> vector<64x16xf32>
    %33 = arith.addf %32, %4 : vector<64x16xf32>
    %cst_31 = arith.constant dense<0xFF800000> : vector<64xf32>
    %34 = vector.multi_reduction <maximumf>, %33, %cst_31 [1] : vector<64x16xf32> to vector<64xf32>
    %35 = vector.shape_cast %34 : vector<64xf32> to vector<64x1xf32>
    %36 = vector.broadcast %35 : vector<64x1xf32> to vector<64x16xf32>
    %37 = arith.subf %33, %36 : vector<64x16xf32>
    %38 = math.exp %37 : vector<64x16xf32>
    %cst_32 = arith.constant dense<0.000000e+00> : vector<64xf32>
    %39 = vector.multi_reduction <add>, %38, %cst_32 [1] : vector<64x16xf32> to vector<64xf32>
    %40 = vector.shape_cast %39 : vector<64xf32> to vector<64x1xf32>
    %41 = tpu.reciprocal %40 {approx = true} : vector<64x1xf32> -> vector<64x1xf32>
    %42 = vector.broadcast %41 : vector<64x1xf32> to vector<64x16xf32>
    %43 = arith.mulf %38, %42 : vector<64x16xf32>
    %cst_33 = arith.constant dense<0.000000e+00> : vector<64x32xf32>
    %44 = tpu.matmul %43, %28, %cst_33 {dimension_numbers = #tpu.dot_dimension_numbers<[1], [0], [0], [1], [0, 0, 1, 1], [], []>} : vector<64x16xf32>, vector<16x32xf32>, vector<64x32xf32> -> vector<64x32xf32>
    %45 = arith.mulf %44, %6 : vector<64x32xf32>
    %46 = vector.extract_strided_slice %45 {offsets = [0, 0], sizes = [16, 32], strides = [1, 1]} : vector<64x32xf32> to vector<16x32xf32>
    %47 = vector.extract_strided_slice %45 {offsets = [16, 0], sizes = [16, 32], strides = [1, 1]} : vector<64x32xf32> to vector<16x32xf32>
    %48 = arith.addf %46, %47 : vector<16x32xf32>
    %49 = vector.extract_strided_slice %45 {offsets = [32, 0], sizes = [16, 32], strides = [1, 1]} : vector<64x32xf32> to vector<16x32xf32>
    %50 = arith.addf %48, %49 : vector<16x32xf32>
    %51 = vector.extract_strided_slice %45 {offsets = [48, 0], sizes = [16, 32], strides = [1, 1]} : vector<64x32xf32> to vector<16x32xf32>
    %52 = arith.addf %50, %51 : vector<16x32xf32>
    %cst_34 = arith.constant dense<0.000000e+00> : vector<16x32xf32>
    %53 = tpu.matmul %52, %15, %cst_34 {dimension_numbers = #tpu.dot_dimension_numbers<[1], [0], [0], [1], [0, 0, 1, 1], [], []>} : vector<16x32xf32>, vector<32x32xf32>, vector<16x32xf32> -> vector<16x32xf32>
    %54 = vector.broadcast %29 : vector<1x32xf32> to vector<16x32xf32>
    %55 = arith.addf %53, %54 : vector<16x32xf32>
    %56 = arith.addf %1, %55 : vector<16x32xf32>
    %57 = vector.extract_strided_slice %21 {offsets = [4, 0], sizes = [1, 32], strides = [1, 1]} : vector<12x96xf32> to vector<1x32xf32>
    %58 = vector.extract_strided_slice %21 {offsets = [5, 0], sizes = [1, 32], strides = [1, 1]} : vector<12x96xf32> to vector<1x32xf32>
    %cst_35 = arith.constant dense<0.000000e+00> : vector<16xf32>
    %59 = vector.multi_reduction <add>, %56, %cst_35 [1] : vector<16x32xf32> to vector<16xf32>
    %60 = vector.shape_cast %59 : vector<16xf32> to vector<16x1xf32>
    %cst_36 = arith.constant 3.200000e+01 : f32
    %61 = vector.broadcast %cst_36 : f32 to vector<16x1xf32>
    %62 = arith.divf %60, %61 : vector<16x1xf32>
    %63 = vector.broadcast %62 : vector<16x1xf32> to vector<16x32xf32>
    %64 = arith.subf %56, %63 : vector<16x32xf32>
    %65 = arith.mulf %64, %64 : vector<16x32xf32>
    %cst_37 = arith.constant dense<0.000000e+00> : vector<16xf32>
    %66 = vector.multi_reduction <add>, %65, %cst_37 [1] : vector<16x32xf32> to vector<16xf32>
    %67 = vector.shape_cast %66 : vector<16xf32> to vector<16x1xf32>
    %cst_38 = arith.constant 3.200000e+01 : f32
    %68 = vector.broadcast %cst_38 : f32 to vector<16x1xf32>
    %69 = arith.divf %67, %68 : vector<16x1xf32>
    %70 = vector.broadcast %62 : vector<16x1xf32> to vector<16x32xf32>
    %71 = arith.subf %56, %70 : vector<16x32xf32>
    %cst_39 = arith.constant 9.99999974E-6 : f32
    %72 = vector.broadcast %cst_39 : f32 to vector<16x1xf32>
    %73 = arith.addf %69, %72 : vector<16x1xf32>
    %74 = math.rsqrt %73 : vector<16x1xf32>
    %75 = vector.broadcast %74 : vector<16x1xf32> to vector<16x32xf32>
    %76 = arith.mulf %71, %75 : vector<16x32xf32>
    %77 = vector.broadcast %57 : vector<1x32xf32> to vector<16x32xf32>
    %78 = arith.mulf %76, %77 : vector<16x32xf32>
    %79 = vector.broadcast %58 : vector<1x32xf32> to vector<16x32xf32>
    %80 = arith.addf %78, %79 : vector<16x32xf32>
    %81 = vector.extract_strided_slice %13 {offsets = [0, 0], sizes = [32, 64], strides = [1, 1]} : vector<32x96xf32> to vector<32x64xf32>
    %cst_40 = arith.constant dense<0.000000e+00> : vector<32x64xf32>
    %82 = tpu.matmul %3, %81, %cst_40 {dimension_numbers = #tpu.dot_dimension_numbers<[1], [0], [0], [1], [0, 0, 1, 1], [], []>} : vector<32x32xf32>, vector<32x64xf32>, vector<32x64xf32> -> vector<32x64xf32>
    %83 = vector.extract_strided_slice %21 {offsets = [1, 0], sizes = [1, 64], strides = [1, 1]} : vector<12x96xf32> to vector<1x64xf32>
    %84 = vector.broadcast %83 : vector<1x64xf32> to vector<32x64xf32>
    %85 = arith.addf %82, %84 : vector<32x64xf32>
    %86 = vector.extract_strided_slice %13 {offsets = [0, 64], sizes = [32, 32], strides = [1, 1]} : vector<32x96xf32> to vector<32x32xf32>
    %cst_41 = arith.constant dense<0.000000e+00> : vector<16x32xf32>
    %87 = tpu.matmul %80, %86, %cst_41 {dimension_numbers = #tpu.dot_dimension_numbers<[1], [0], [0], [1], [0, 0, 1, 1], [], []>} : vector<16x32xf32>, vector<32x32xf32>, vector<16x32xf32> -> vector<16x32xf32>
    %88 = vector.extract_strided_slice %21 {offsets = [1, 64], sizes = [1, 32], strides = [1, 1]} : vector<12x96xf32> to vector<1x32xf32>
    %89 = vector.broadcast %88 : vector<1x32xf32> to vector<16x32xf32>
    %90 = arith.addf %87, %89 : vector<16x32xf32>
    %91 = vector.extract_strided_slice %85 {offsets = [0, 0], sizes = [32, 32], strides = [1, 1]} : vector<32x64xf32> to vector<32x32xf32>
    %92 = vector.extract_strided_slice %85 {offsets = [0, 32], sizes = [32, 32], strides = [1, 1]} : vector<32x64xf32> to vector<32x32xf32>
    %93 = vector.extract_strided_slice %21 {offsets = [3, 0], sizes = [1, 32], strides = [1, 1]} : vector<12x96xf32> to vector<1x32xf32>
    %94 = tpu.concatenate %90, %90, %90, %90 in 0 : vector<16x32xf32>, vector<16x32xf32>, vector<16x32xf32>, vector<16x32xf32> -> vector<64x32xf32>
    %95 = arith.mulf %94, %6 : vector<64x32xf32>
    %cst_42 = arith.constant dense<0.000000e+00> : vector<64x32xf32>
    %96 = tpu.matmul %95, %91, %cst_42 {dimension_numbers = #tpu.dot_dimension_numbers<[1], [1], [0], [0], [0, 0, 1, 0], [], []>} : vector<64x32xf32>, vector<32x32xf32>, vector<64x32xf32> -> vector<64x32xf32>
    %97 = arith.addf %96, %5 : vector<64x32xf32>
    %cst_43 = arith.constant dense<0xFF800000> : vector<64xf32>
    %98 = vector.multi_reduction <maximumf>, %97, %cst_43 [1] : vector<64x32xf32> to vector<64xf32>
    %99 = vector.shape_cast %98 : vector<64xf32> to vector<64x1xf32>
    %100 = vector.broadcast %99 : vector<64x1xf32> to vector<64x32xf32>
    %101 = arith.subf %97, %100 : vector<64x32xf32>
    %102 = math.exp %101 : vector<64x32xf32>
    %cst_44 = arith.constant dense<0.000000e+00> : vector<64xf32>
    %103 = vector.multi_reduction <add>, %102, %cst_44 [1] : vector<64x32xf32> to vector<64xf32>
    %104 = vector.shape_cast %103 : vector<64xf32> to vector<64x1xf32>
    %105 = tpu.reciprocal %104 {approx = true} : vector<64x1xf32> -> vector<64x1xf32>
    %106 = vector.broadcast %105 : vector<64x1xf32> to vector<64x32xf32>
    %107 = arith.mulf %102, %106 : vector<64x32xf32>
    %cst_45 = arith.constant dense<0.000000e+00> : vector<64x32xf32>
    %108 = tpu.matmul %107, %92, %cst_45 {dimension_numbers = #tpu.dot_dimension_numbers<[1], [0], [0], [1], [0, 0, 1, 1], [], []>} : vector<64x32xf32>, vector<32x32xf32>, vector<64x32xf32> -> vector<64x32xf32>
    %109 = arith.mulf %108, %6 : vector<64x32xf32>
    %110 = vector.extract_strided_slice %109 {offsets = [0, 0], sizes = [16, 32], strides = [1, 1]} : vector<64x32xf32> to vector<16x32xf32>
    %111 = vector.extract_strided_slice %109 {offsets = [16, 0], sizes = [16, 32], strides = [1, 1]} : vector<64x32xf32> to vector<16x32xf32>
    %112 = arith.addf %110, %111 : vector<16x32xf32>
    %113 = vector.extract_strided_slice %109 {offsets = [32, 0], sizes = [16, 32], strides = [1, 1]} : vector<64x32xf32> to vector<16x32xf32>
    %114 = arith.addf %112, %113 : vector<16x32xf32>
    %115 = vector.extract_strided_slice %109 {offsets = [48, 0], sizes = [16, 32], strides = [1, 1]} : vector<64x32xf32> to vector<16x32xf32>
    %116 = arith.addf %114, %115 : vector<16x32xf32>
    %cst_46 = arith.constant dense<0.000000e+00> : vector<16x32xf32>
    %117 = tpu.matmul %116, %17, %cst_46 {dimension_numbers = #tpu.dot_dimension_numbers<[1], [0], [0], [1], [0, 0, 1, 1], [], []>} : vector<16x32xf32>, vector<32x32xf32>, vector<16x32xf32> -> vector<16x32xf32>
    %118 = vector.broadcast %93 : vector<1x32xf32> to vector<16x32xf32>
    %119 = arith.addf %117, %118 : vector<16x32xf32>
    %120 = arith.addf %80, %119 : vector<16x32xf32>
    %121 = vector.extract_strided_slice %21 {offsets = [6, 0], sizes = [1, 32], strides = [1, 1]} : vector<12x96xf32> to vector<1x32xf32>
    %122 = vector.extract_strided_slice %21 {offsets = [7, 0], sizes = [1, 32], strides = [1, 1]} : vector<12x96xf32> to vector<1x32xf32>
    %cst_47 = arith.constant dense<0.000000e+00> : vector<16xf32>
    %123 = vector.multi_reduction <add>, %120, %cst_47 [1] : vector<16x32xf32> to vector<16xf32>
    %124 = vector.shape_cast %123 : vector<16xf32> to vector<16x1xf32>
    %cst_48 = arith.constant 3.200000e+01 : f32
    %125 = vector.broadcast %cst_48 : f32 to vector<16x1xf32>
    %126 = arith.divf %124, %125 : vector<16x1xf32>
    %127 = vector.broadcast %126 : vector<16x1xf32> to vector<16x32xf32>
    %128 = arith.subf %120, %127 : vector<16x32xf32>
    %129 = arith.mulf %128, %128 : vector<16x32xf32>
    %cst_49 = arith.constant dense<0.000000e+00> : vector<16xf32>
    %130 = vector.multi_reduction <add>, %129, %cst_49 [1] : vector<16x32xf32> to vector<16xf32>
    %131 = vector.shape_cast %130 : vector<16xf32> to vector<16x1xf32>
    %cst_50 = arith.constant 3.200000e+01 : f32
    %132 = vector.broadcast %cst_50 : f32 to vector<16x1xf32>
    %133 = arith.divf %131, %132 : vector<16x1xf32>
    %134 = vector.broadcast %126 : vector<16x1xf32> to vector<16x32xf32>
    %135 = arith.subf %120, %134 : vector<16x32xf32>
    %cst_51 = arith.constant 9.99999974E-6 : f32
    %136 = vector.broadcast %cst_51 : f32 to vector<16x1xf32>
    %137 = arith.addf %133, %136 : vector<16x1xf32>
    %138 = math.rsqrt %137 : vector<16x1xf32>
    %139 = vector.broadcast %138 : vector<16x1xf32> to vector<16x32xf32>
    %140 = arith.mulf %135, %139 : vector<16x32xf32>
    %141 = vector.broadcast %121 : vector<1x32xf32> to vector<16x32xf32>
    %142 = arith.mulf %140, %141 : vector<16x32xf32>
    %143 = vector.broadcast %122 : vector<1x32xf32> to vector<16x32xf32>
    %144 = arith.addf %142, %143 : vector<16x32xf32>
    %145 = vector.extract_strided_slice %19 {offsets = [0, 0], sizes = [32, 64], strides = [1, 1]} : vector<96x64xf32> to vector<32x64xf32>
    %cst_52 = arith.constant dense<0.000000e+00> : vector<16x64xf32>
    %146 = tpu.matmul %144, %145, %cst_52 {dimension_numbers = #tpu.dot_dimension_numbers<[1], [0], [0], [1], [0, 0, 1, 1], [], []>} : vector<16x32xf32>, vector<32x64xf32>, vector<16x64xf32> -> vector<16x64xf32>
    %147 = vector.extract_strided_slice %21 {offsets = [10, 0], sizes = [1, 64], strides = [1, 1]} : vector<12x96xf32> to vector<1x64xf32>
    %148 = vector.broadcast %147 : vector<1x64xf32> to vector<16x64xf32>
    %149 = arith.addf %146, %148 : vector<16x64xf32>
    %cst_53 = arith.constant 0.000000e+00 : f32
    %150 = vector.broadcast %cst_53 : f32 to vector<16x64xf32>
    %151 = arith.maximumf %149, %150 : vector<16x64xf32>
    %152 = vector.extract_strided_slice %19 {offsets = [32, 0], sizes = [64, 32], strides = [1, 1]} : vector<96x64xf32> to vector<64x32xf32>
    %cst_54 = arith.constant dense<0.000000e+00> : vector<16x32xf32>
    %153 = tpu.matmul %151, %152, %cst_54 {dimension_numbers = #tpu.dot_dimension_numbers<[1], [0], [0], [1], [0, 0, 1, 1], [], []>} : vector<16x64xf32>, vector<64x32xf32>, vector<16x32xf32> -> vector<16x32xf32>
    %154 = vector.extract_strided_slice %21 {offsets = [11, 0], sizes = [1, 32], strides = [1, 1]} : vector<12x96xf32> to vector<1x32xf32>
    %155 = vector.broadcast %154 : vector<1x32xf32> to vector<16x32xf32>
    %156 = arith.addf %153, %155 : vector<16x32xf32>
    %157 = arith.addf %144, %156 : vector<16x32xf32>
    %158 = vector.extract_strided_slice %21 {offsets = [8, 0], sizes = [1, 32], strides = [1, 1]} : vector<12x96xf32> to vector<1x32xf32>
    %159 = vector.extract_strided_slice %21 {offsets = [9, 0], sizes = [1, 32], strides = [1, 1]} : vector<12x96xf32> to vector<1x32xf32>
    %cst_55 = arith.constant dense<0.000000e+00> : vector<16xf32>
    %160 = vector.multi_reduction <add>, %157, %cst_55 [1] : vector<16x32xf32> to vector<16xf32>
    %161 = vector.shape_cast %160 : vector<16xf32> to vector<16x1xf32>
    %cst_56 = arith.constant 3.200000e+01 : f32
    %162 = vector.broadcast %cst_56 : f32 to vector<16x1xf32>
    %163 = arith.divf %161, %162 : vector<16x1xf32>
    %164 = vector.broadcast %163 : vector<16x1xf32> to vector<16x32xf32>
    %165 = arith.subf %157, %164 : vector<16x32xf32>
    %166 = arith.mulf %165, %165 : vector<16x32xf32>
    %cst_57 = arith.constant dense<0.000000e+00> : vector<16xf32>
    %167 = vector.multi_reduction <add>, %166, %cst_57 [1] : vector<16x32xf32> to vector<16xf32>
    %168 = vector.shape_cast %167 : vector<16xf32> to vector<16x1xf32>
    %cst_58 = arith.constant 3.200000e+01 : f32
    %169 = vector.broadcast %cst_58 : f32 to vector<16x1xf32>
    %170 = arith.divf %168, %169 : vector<16x1xf32>
    %171 = vector.broadcast %163 : vector<16x1xf32> to vector<16x32xf32>
    %172 = arith.subf %157, %171 : vector<16x32xf32>
    %cst_59 = arith.constant 9.99999974E-6 : f32
    %173 = vector.broadcast %cst_59 : f32 to vector<16x1xf32>
    %174 = arith.addf %170, %173 : vector<16x1xf32>
    %175 = math.rsqrt %174 : vector<16x1xf32>
    %176 = vector.broadcast %175 : vector<16x1xf32> to vector<16x32xf32>
    %177 = arith.mulf %172, %176 : vector<16x32xf32>
    %178 = vector.broadcast %158 : vector<1x32xf32> to vector<16x32xf32>
    %179 = arith.mulf %177, %178 : vector<16x32xf32>
    %180 = vector.broadcast %159 : vector<1x32xf32> to vector<16x32xf32>
    %181 = arith.addf %179, %180 : vector<16x32xf32>
    %cst_60 = arith.constant dense<0.000000e+00> : vector<16x128xf32>
    %182 = tpu.matmul %181, %8, %cst_60 {dimension_numbers = #tpu.dot_dimension_numbers<[1], [0], [0], [1], [0, 0, 1, 1], [], []>} : vector<16x32xf32>, vector<32x128xf32>, vector<16x128xf32> -> vector<16x128xf32>
    %183 = vector.broadcast %9 : vector<1x128xf32> to vector<16x128xf32>
    %184 = arith.addf %182, %183 : vector<16x128xf32>
    %c0_61 = arith.constant 0 : index
    %c0_62 = arith.constant 0 : index
    %c0_63 = arith.constant 0 : index
    %185 = vector.load %arg11[%c0_61, %c0_62, %c0_63] : memref<1x16x128xf32, #tpu.memory_space<vmem>>, vector<1x16x128xf32>
    %186 = vector.shape_cast %185 : vector<1x16x128xf32> to vector<16x128xf32>
    %187 = vector.shape_cast %184 : vector<16x128xf32> to vector<1x16x128xf32>
    tpu.vector_store %arg11[%c0_61, %c0_62, %c0_63], %187 {strides = array<i32>} : memref<1x16x128xf32, #tpu.memory_space<vmem>>, vector<1x16x128xf32>,
    return
  }
  func.func @transform_0(%arg0: i32) -> (i32, i32, i32) {
    %c0_i32 = arith.constant 0 : i32
    %c0_i32_0 = arith.constant 0 : i32
    %c0_i32_1 = arith.constant 0 : i32
    %c0_i32_2 = arith.constant 0 : i32
    return %c0_i32, %c0_i32_0, %c0_i32_1 : i32, i32, i32
  }
  func.func @transform_1(%arg0: i32) -> (i32, i32, i32) {
    %c0_i32 = arith.constant 0 : i32
    %c0_i32_0 = arith.constant 0 : i32
    %c0_i32_1 = arith.constant 0 : i32
    %c0_i32_2 = arith.constant 0 : i32
    return %c0_i32, %c0_i32_0, %c0_i32_1 : i32, i32, i32
  }
  func.func @transform_2(%arg0: i32) -> (i32, i32) {
    %c0_i32 = arith.constant 0 : i32
    %c0_i32_0 = arith.constant 0 : i32
    %c0_i32_1 = arith.constant 0 : i32
    return %c0_i32, %c0_i32_0 : i32, i32
  }
  func.func @transform_3(%arg0: i32) -> (i32, i32) {
    %c0_i32 = arith.constant 0 : i32
    %c0_i32_0 = arith.constant 0 : i32
    %c0_i32_1 = arith.constant 0 : i32
    return %c0_i32, %c0_i32_0 : i32, i32
  }
  func.func @transform_4(%arg0: i32) -> (i32, i32) {
    %c0_i32 = arith.constant 0 : i32
    %c0_i32_0 = arith.constant 0 : i32
    %c0_i32_1 = arith.constant 0 : i32
    return %c0_i32, %c0_i32_0 : i32, i32
  }
  func.func @transform_5(%arg0: i32) -> (i32, i32, i32) {
    %c0_i32 = arith.constant 0 : i32
    %c0_i32_0 = arith.constant 0 : i32
    %c0_i32_1 = arith.constant 0 : i32
    %c0_i32_2 = arith.constant 0 : i32
    return %c0_i32, %c0_i32_0, %c0_i32_1 : i32, i32, i32
  }
  func.func @transform_6(%arg0: i32) -> (i32, i32, i32) {
    %c0_i32 = arith.constant 0 : i32
    %c0_i32_0 = arith.constant 0 : i32
    %c0_i32_1 = arith.constant 0 : i32
    %c0_i32_2 = arith.constant 0 : i32
    return %c0_i32, %c0_i32_0, %c0_i32_1 : i32, i32, i32
  }
  func.func @transform_7(%arg0: i32) -> (i32, i32, i32) {
    %c0_i32 = arith.constant 0 : i32
    %c0_i32_0 = arith.constant 0 : i32
    %c0_i32_1 = arith.constant 0 : i32
    %c0_i32_2 = arith.constant 0 : i32
    return %c0_i32, %c0_i32_0, %c0_i32_1 : i32, i32, i32
  }
  func.func @transform_8(%arg0: i32) -> (i32, i32, i32) {
    %c0_i32 = arith.constant 0 : i32
    %c0_i32_0 = arith.constant 0 : i32
    %c0_i32_1 = arith.constant 0 : i32
    %c0_i32_2 = arith.constant 0 : i32
    return %c0_i32, %c0_i32_0, %c0_i32_1 : i32, i32, i32
  }
  func.func @transform_9(%arg0: i32) -> (i32, i32) {
    %c0_i32 = arith.constant 0 : i32
    %c0_i32_0 = arith.constant 0 : i32
    %c0_i32_1 = arith.constant 0 : i32
    return %c0_i32, %c0_i32_0 : i32, i32
  }
  func.func @transform_10(%arg0: i32) -> (i32, i32, i32) {
    %c0_i32 = arith.constant 0 : i32
    %c0_i32_0 = arith.constant 0 : i32
    %c0_i32_1 = arith.constant 0 : i32
    %c0_i32_2 = arith.constant 0 : i32
    return %c0_i32, %c0_i32_0, %c0_i32_1 : i32, i32, i32
  }
}

</mosaic_0001>

<bundles_post_ra>
// kernel: tpu_custom_call.1
= control target key start
LH: loop header
LB: loop body
LE: loop exit
PB: predicated region body
PF: predicated region fallthrough
CT: control target
= control target key end

     0   :  { %vm107_vm0 = vcmask 261120   ;;  %s2826_s0 = inlined_call_operand.vmem [shape: f32[2,8,32], index: 0, kind: input, shape index: {}]   ;;  %s2827_s1 = inlined_call_operand.vmem [shape: f32[2,16,32], index: 1, kind: input, shape index: {}]   ;;  %s2828_s2 = inlined_call_operand.vmem [shape: f32[64,16], index: 2, kind: input, shape index: {}]   ;;  %s2829_s3 = inlined_call_operand.vmem [shape: f32[64,32], index: 3, kind: input, shape index: {}]   ;;  %s2830_s4 = inlined_call_operand.vmem [shape: f32[64,32], index: 4, kind: input, shape index: {}]   ;;  %s2831_s5 = inlined_call_operand.vmem [shape: f32[2,32,96], index: 5, kind: input, shape index: {}]   ;;  %s2832_s6 = inlined_call_operand.vmem [shape: f32[2,32,32], index: 6, kind: input, shape index: {}]   ;;  %s2833_s7 = inlined_call_operand.vmem [shape: f32[1,96,64], index: 7, kind: input, shape index: {}]   ;;  %s2834_s8 = inlined_call_operand.vmem [shape: f32[1,12,96], index: 8, kind: input, shape index: {}]   ;;  %s2835_s9 = inlined_call_operand.vmem [shape: f32[33,128], index: 9, kind: input, shape index: {}]   ;;  %s2836_s10 = inlined_call_operand.hbm [shape: f32[1,16,128], index: 10, kind: output, shape index: {}]  }
   0x1   :  { %v71_v0 = vld [vmem:[%s2831_s5] sm:$0xff]  ;;  %v72_v1 = vld [vmem:[%s2831_s5 + $0x8] sm:$0xff]  ;;  %v73_v2 = vld [vmem:[%s2831_s5 + $0x10] sm:$0xff] }
   0x2   :  { %v2069_v3 = vpack.c.bf16 %v72_v1, %v71_v0  ;;  %v74_v4 = vld [vmem:[%s2831_s5 + $0x18] sm:$0xff]  ;;  %v2382_v5 = vld [vmem:[%s2826_s0] sm:$0xff] }
   0x3   :  { %v2073_v6 = vpack.c.bf16 %v74_v4, %v73_v2  ;;  %1906 = vmatprep.mubr.msk.f32.mxu0 %vm107_vm0, %v2382_v5 }
   0x4   :  { %15 = vsyncpa [#allocation3], 0  ;;  %2070 = vmatprep.subr.bf16.mxu0 %v2069_v3  ;;  %v2389_v7 = vld [vmem:[%s2826_s0 + $0x8] sm:$0xff]  ;;  %v103_v8 = vlaneseq  ;;  %v2399_v11 = vld [vmem:[%s2834_s8] sm:$0xff]  ;;  %s2307_s28 = smov 96   ;;  %vm336_vm2 = vcmask 130048  }
   0x5   :  { %2072 = vmatpush3.bf16.msra.mxu0 %v2069_v3  ;;  %v2407_v16 = vld [vmem:[%s2830_s4] sm:$0xff]  ;;  %vm2417_vm1 = vmpackc.low %vm107_vm0, %vm107_vm0  ;;  %v2428_v25 = vld [vmem:[%s2830_s4 + $0x8] sm:$0xff]  ;;  %vm1510_vm3 = vcmask 523264   ;;  %s2309_s24 = smov [#allocation2]  }
   0x6   :  { %2074 = vmatprep.subr.bf16.mxu0 %v2073_v6  ;;  %v2393_v9 = vshrl.u32 %v103_v8, 7  ;;  %v2433_v26 = vld [vmem:[%s2830_s4 + $0x10] sm:$0xff]  ;;  %v2440_v29 = vld [vmem:[%s2830_s4 + $0x18] sm:$0xff]  ;;  %v2446_v30 = vld [vmem:[%s2830_s4 + $0x20] sm:$0xff]  ;;  %s1724_s25 = sshll.u32 %s2309_s24, 4  ;;  %s1725_s25 = int_to_ptr.vmem [resolvable:$true] %s1724_s25 }
   0x7   :  { %v2454_v33 = vld [vmem:[%s2830_s4 + $0x28] sm:$0xff]  ;;  %v2460_v34 = vld [vmem:[%s2830_s4 + $0x30] sm:$0xff]  ;;  %v2468_v37 = vld [vmem:[%s2830_s4 + $0x38] sm:$0xff]  ;;  %s2283_s26 = scalar_lea.vmem %s1725_s25, 256  ;;  %p2288_p1 = scmp.lt.s32.totalorder %s1725_s25, %s1725_s25 }
   0x8   :  { %v105_v10 = vsub.s32 0, %v2393_v9  ;;  %v43_v39 = vld [vmem:[%s2828_s2 + $0x8] sm:$0xff]  ;;  %v42_v40 = vld [vmem:[%s2828_s2] sm:$0xff]  ;;  %v45_v45 = vld [vmem:[%s2828_s2 + $0x18] sm:$0xff]  ;;  %p2284_p0 = scmp.ne.s32.totalorder %s1725_s25, %s2283_s26  ;;  %p2289_p2 = scmp.lt.s32.totalorder %s2283_s26, %s2283_s26 }
   0x9   :  { %2076 = vmatpush3.bf16.msra.mxu0 %v2073_v6  ;;  %v44_v48 = vld [vmem:[%s2828_s2 + $0x10] sm:$0xff]  ;;  %v47_v54 = vld [vmem:[%s2828_s2 + $0x28] sm:$0xff]  ;;  %v46_v59 = vld [vmem:[%s2828_s2 + $0x20] sm:$0xff] }
   0xa   :  { %v106_v12 = vrot.slane %v2399_v11, %v105_v10  ;;  %v48_v0 = vld [vmem:[%s2828_s2 + $0x30] sm:$0xff]  ;;  %v49_v3 = vld [vmem:[%s2828_s2 + $0x38] sm:$0xff]  ;;  %s2308_s2 = smov 64   ;;  %p2290_p3 = por %p2289_p2, %p2288_p1 }
   0xc   :  { %1907 = vmatmul.mubr.msk.f32.vlgmr.msra.gmra.mrb[0].mxu0 %vm107_vm0, %v2389_v7  ;;  %p2291_p4 = pnand %p2290_p3, %p2284_p0 }
  0xdf   :  { %v1908_v13 = vpop.f32.mrb[0].mxu0 }
  0xe0   :  { %v186_v14 = vadd.f32 %v1908_v13, %v106_v12  ;;  %v180_v15 = vpop.f32.mrb[1].mxu0 }
  0xe1   :  { %v181_v17 = vadd.f32 %v180_v15, %v106_v12 }
  0xe2   :  { %v190_v27 = vmul.f32 %v186_v14, %v2428_v25  ;;  %v192_v31 = vmul.f32 %v186_v14, %v2440_v29  ;;  %v194_v35 = vmul.f32 %v186_v14, %v2454_v33  ;;  %v196_v38 = vmul.f32 %v186_v14, %v2468_v37 }
  0xe3   :  { %v2409_v18 = vpack.i.bf16 %v186_v14, %v181_v17  ;;  %v189_v19 = vmul.f32 %v181_v17, %v2407_v16  ;;  %v191_v28 = vmul.f32 %v181_v17, %v2433_v26  ;;  %v193_v32 = vmul.f32 %v181_v17, %v2446_v30 }
  0xe4   :  { %v195_v36 = vmul.f32 %v181_v17, %v2460_v34 }
  0xe5   :  { %2177 = vrot.lane.b32.xlu0 %v2409_v18, %s2307_s28  ;;  %1913 = vmatprep.mubr.msk.f32.mxu1 %vm107_vm0, %v189_v19 }
 0x157   :  { %v2178_v20 = vpop.permute.xlu0 %2177 }
 0x158   :  { %v2180_v21 = vunpack.i.h.bf16 %v2178_v20  ;;  %v2179_v22 = vunpack.i.l.bf16 %v2178_v20 }
 0x15a   :  { %v2077_v24 = vpack.c.bf16 %v2180_v21, %v2179_v22 }
 0x15c   :  { %2079 = vmatprep.subr.msk.bf16.mxu1 %vm2417_vm1, %v2077_v24 }
 0x15d   :  { %2082 = vmatpush3.bf16.xpose.msk.msra.mxu1 %vm2417_vm1, %v2077_v24 }
 0x164   :  { %1914 = vmatmul.mubr.msk.f32.vlgmr.msra.gmra.mrb[0].mxu1 %vm107_vm0, %v190_v27 }
 0x165   :  { %1916 = vmatprep.mubr.msk.f32.mxu1 %vm107_vm0, %v191_v28 }
 0x168   :  { %1917 = vmatmul.mubr.msk.f32.gmra.mrb[2].mxu1 %vm107_vm0, %v192_v31 }
 0x169   :  { %1919 = vmatprep.mubr.msk.f32.mxu1 %vm107_vm0, %v193_v32 }
 0x16c   :  { %1920 = vmatmul.mubr.msk.f32.gmra.mrb[4].mxu1 %vm107_vm0, %v194_v35 }
 0x16d   :  { %1922 = vmatprep.mubr.msk.f32.mxu1 %vm107_vm0, %v195_v36 }
 0x170   :  { %1923 = vmatmul.mubr.msk.f32.gmra.mrb[6].mxu1 %vm107_vm0, %v196_v38 }
 0x237   :  { %v1915_v41 = vpop.f32.mrb[0].mxu1 }
 0x238   :  { %v303_v42 = vadd.f32 %v1915_v41, %v43_v39  ;;  %v297_v43 = vpop.f32.mrb[1].mxu1 }
 0x239   :  { %v298_v44 = vadd.f32 %v297_v43, %v42_v40 }
 0x23a   :  { %v340_v46 = vsel %vm336_vm2, %v303_v42, -inf }
 0x23b   :  { %341 = vmax.xlane.f32.xlu1 %v340_v46  ;;  %v1918_v47 = vpop.f32.mrb[2].mxu1  ;;  %v337_v49 = vsel %vm336_vm2, %v298_v44, -inf }
 0x23c   :  { %v313_v50 = vadd.f32 %v1918_v47, %v45_v45  ;;  %v307_v51 = vpop.f32.mrb[3].mxu1  ;;  %338 = vmax.xlane.f32.xlu0 %v337_v49 }
 0x23d   :  { %v308_v52 = vadd.f32 %v307_v51, %v44_v48 }
 0x23e   :  { %v346_v53 = vsel %vm336_vm2, %v313_v50, -inf }
 0x23f   :  { %347 = vmax.xlane.f32.xlu1 %v346_v53  ;;  %v1921_v55 = vpop.f32.mrb[4].mxu1  ;;  %v343_v58 = vsel %vm336_vm2, %v308_v52, -inf }
 0x240   :  { %v317_v56 = vpop.f32.mrb[5].mxu1  ;;  %v323_v57 = vadd.f32 %v1921_v55, %v47_v54 }
 0x241   :  { %v318_v62 = vadd.f32 %v317_v56, %v46_v59 }
 0x242   :  { %v352_v63 = vsel %vm336_vm2, %v323_v57, -inf }
 0x243   :  { %v1924_v60 = vpop.f32.mrb[6].mxu1  ;;  %344 = vmax.xlane.f32.xlu1 %v343_v58  ;;  %v349_v2 = vsel %vm336_vm2, %v318_v62, -inf }
 0x244   :  { %v327_v61 = vpop.f32.mrb[7].mxu1  ;;  %v333_v4 = vadd.f32 %v1924_v60, %v49_v3 }
 0x245   :  { %v328_v1 = vadd.f32 %v327_v61, %v48_v0 }
 0x246   :  { %v358_v8 = vsel %vm336_vm2, %v333_v4, -inf }
 0x247   :  { %353 = vmax.xlane.f32.xlu1 %v352_v63  ;;  %v355_v6 = vsel %vm336_vm2, %v328_v1, -inf }
 0x24b   :  { %350 = vmax.xlane.f32.xlu1 %v349_v2 }
 0x24f   :  { %356 = vmax.xlane.f32.xlu1 %v355_v6 }
 0x253   :  { %359 = vmax.xlane.f32.xlu1 %v358_v8 }
 0x2c8   :  { %v342_v12 = vpop.xlane.xlu1 %341 }
 0x2c9   :  { %v362_v13 = vsub.f32 %v303_v42, %v342_v12  ;;  %v339_v14 = vpop.xlane.xlu0 %338 }
 0x2ca   :  { %v361_v15 = vsub.f32 %v298_v44, %v339_v14 }
 0x2cb   :  { %v371_v17 = vmul.f32 1.442695, %v362_v13 }
 0x2cc   :  { %v369_v19 = vmul.f32 1.442695, %v361_v15  ;;  %v348_v20 = vpop.xlane.xlu1 %347 }
 0x2cd   :  { %v364_v21 = vsub.f32 %v313_v50, %v348_v20 }
 0x2ce   :  { %2206 = vpow2.f32 %v369_v19 }
 0x2cf   :  { %2208 = vpow2.f32 %v371_v17  ;;  %v375_v22 = vmul.f32 1.442695, %v364_v21 }
 0x2d0   :  { %v345_v24 = vpop.xlane.xlu1 %344 }
 0x2d1   :  { %v363_v27 = vsub.f32 %v308_v52, %v345_v24  ;;  %2210 = vpow2.f32 %v375_v22 }
 0x2d3   :  { %v373_v28 = vmul.f32 1.442695, %v363_v27 }
 0x2d4   :  { %v354_v31 = vpop.xlane.xlu1 %353 }
 0x2d5   :  { %2212 = vpow2.f32 %v373_v28  ;;  %v366_v32 = vsub.f32 %v323_v57, %v354_v31 }
 0x2d7   :  { %v379_v35 = vmul.f32 1.442695, %v366_v32 }
 0x2d8   :  { %v2207_v36 = vpop.eup %2206  ;;  %v351_v38 = vpop.xlane.xlu1 %350 }
 0x2d9   :  { %2214 = vpow2.f32 %v379_v35  ;;  %v365_v39 = vsub.f32 %v318_v62, %v351_v38  ;;  %v385_v40 = vsel %vm336_vm2, %v2207_v36, 0.0  ;;  %v2209_v41 = vpop.eup %2208 }
 0x2da   :  { %386 = vadd.xlane.f32.xlu1 %v385_v40  ;;  %v388_v45 = vsel %vm336_vm2, %v2209_v41, 0.0  ;;  %v80_v40 = vld [vmem:[%s2832_s6] sm:$0xff] }
 0x2db   :  { %v377_v42 = vmul.f32 1.442695, %v365_v39  ;;  %v2211_v46 = vpop.eup %2210 }
 0x2dc   :  { %v357_v43 = vpop.xlane.xlu1 %356  ;;  %v394_v52 = vsel %vm336_vm2, %v2211_v46, 0.0 }
 0x2dd   :  { %2216 = vpow2.f32 %v377_v42  ;;  %v367_v44 = vsub.f32 %v328_v1, %v357_v43  ;;  %v82_v43 = vld [vmem:[%s2832_s6 + $0x10] sm:$0xff] }
 0x2de   :  { %389 = vadd.xlane.f32.xlu1 %v388_v45 }
 0x2df   :  { %v2213_v47 = vpop.eup %2212  ;;  %v381_v48 = vmul.f32 1.442695, %v367_v44  ;;  %v83_v44 = vld [vmem:[%s2832_s6 + $0x18] sm:$0xff] }
 0x2e0   :  { %v360_v49 = vpop.xlane.xlu1 %359  ;;  %v391_v50 = vsel %vm336_vm2, %v2213_v47, 0.0  ;;  %v2091_v45 = vpack.c.bf16 %v83_v44, %v82_v43  ;;  %v38_v44 = vld [vmem:[%s2827_s1] sm:$0xff] }
 0x2e1   :  { %2218 = vpow2.f32 %v381_v48  ;;  %v368_v51 = vsub.f32 %v333_v4, %v360_v49  ;;  %392 = vadd.xlane.f32.xlu0 %v391_v50 }
 0x2e2   :  { %395 = vadd.xlane.f32.xlu1 %v394_v52 }
 0x2e3   :  { %v2215_v53 = vpop.eup %2214  ;;  %v383_v54 = vmul.f32 1.442695, %v368_v51 }
 0x2e4   :  { %v400_v55 = vsel %vm336_vm2, %v2215_v53, 0.0 }
 0x2e5   :  { %2220 = vpow2.f32 %v383_v54 }
 0x2e6   :  { %401 = vadd.xlane.f32.xlu1 %v400_v55 }
 0x2e7   :  { %v2217_v56 = vpop.eup %2216 }
 0x2e8   :  { %v397_v57 = vsel %vm336_vm2, %v2217_v56, 0.0 }
 0x2e9   :  { %398 = vadd.xlane.f32.xlu0 %v397_v57 }
 0x2eb   :  { %v2219_v58 = vpop.eup %2218 }
 0x2ec   :  { %v403_v59 = vsel %vm336_vm2, %v2219_v58, 0.0 }
 0x2ed   :  { %404 = vadd.xlane.f32.xlu0 %v403_v59 }
 0x2ef   :  { %v2221_v60 = vpop.eup %2220 }
 0x2f0   :  { %v406_v61 = vsel %vm336_vm2, %v2221_v60, 0.0 }
 0x2f1   :  { %407 = vadd.xlane.f32.xlu1 %v406_v61 }
 0x303   :  { %2182 = vrot.lane.b32.xlu0 %v2409_v18, %s2308_s2 }
 0x367   :  { %v387_v62 = vpop.xlane.xlu1 %386 }
 0x368   :  { %2222 = vrcp.f32 %v387_v62 }
 0x36b   :  { %v390_v63 = vpop.xlane.xlu1 %389 }
 0x36c   :  { %2224 = vrcp.f32 %v390_v63 }
 0x36e   :  { %v393_v1 = vpop.xlane.xlu0 %392 }
 0x36f   :  { %v396_v4 = vpop.xlane.xlu1 %395  ;;  %2226 = vrcp.f32 %v393_v1 }
 0x370   :  { %2228 = vrcp.f32 %v396_v4  ;;  %v576_v4 = vsub.s32 2, %v2393_v9 }
 0x372   :  { %v2223_v0 = vpop.eup %2222 }
 0x373   :  { %v417_v2 = vmul.f32 %v2223_v0, %v2207_v36  ;;  %v402_v8 = vpop.xlane.xlu1 %401 }
 0x375   :  { %1929 = vmatprep.mubr.msk.f32.mxu0 %vm336_vm2, %v417_v2 }
 0x376   :  { %v399_v3 = vpop.xlane.xlu0 %398  ;;  %v2225_v17 = vpop.eup %2224 }
 0x377   :  { %2230 = vrcp.f32 %v399_v3  ;;  %v418_v20 = vmul.f32 %v2225_v17, %v2209_v41  ;;  %v81_v41 = vld [vmem:[%s2832_s6 + $0x8] sm:$0xff] }
 0x378   :  { %2232 = vrcp.f32 %v402_v8  ;;  %v2087_v42 = vpack.c.bf16 %v81_v41, %v80_v40 }
 0x379   :  { %v2227_v19 = vpop.eup %2226 }
 0x37a   :  { %v405_v6 = vpop.xlane.xlu0 %404  ;;  %v2229_v21 = vpop.eup %2228  ;;  %v419_v22 = vmul.f32 %v2227_v19, %v2213_v47  ;;  %2088 = vmatprep.subr.bf16.mxu1 %v2087_v42 }
 0x37b   :  { %2234 = vrcp.f32 %v405_v6  ;;  %v420_v27 = vmul.f32 %v2229_v21, %v2211_v46  ;;  %2090 = vmatpush3.bf16.msra.mxu1 %v2087_v42  ;;  %v577_v6 = vrot.slane %v2399_v11, %v576_v4  ;;  %v1736_v21 = vld [vmem:[%s2831_s5 + $0x28] sm:$0xff] }
 0x37c   :  { %2092 = vmatprep.subr.bf16.mxu1 %v2091_v45 }
 0x37e   :  { %v2183_v12 = vpop.permute.xlu0 %2182  ;;  %v408_v18 = vpop.xlane.xlu1 %407 }
 0x37f   :  { %v2185_v13 = vunpack.i.h.bf16 %v2183_v12  ;;  %v2184_v14 = vunpack.i.l.bf16 %v2183_v12  ;;  %2236 = vrcp.f32 %v408_v18  ;;  %2094 = vmatpush3.bf16.msra.mxu1 %v2091_v45  ;;  %v39_v45 = vld [vmem:[%s2827_s1 + $0x8] sm:$0xff] }
 0x381   :  { %v2083_v15 = vpack.c.bf16 %v2185_v13, %v2184_v14  ;;  %v2231_v24 = vpop.eup %2230 }
 0x382   :  { %v2233_v28 = vpop.eup %2232  ;;  %v421_v31 = vmul.f32 %v2231_v24, %v2217_v56 }
 0x383   :  { %2084 = vmatprep.subr.bf16.mxu0 %v2083_v15  ;;  %v422_v35 = vmul.f32 %v2233_v28, %v2215_v53 }
 0x384   :  { %2086 = vmatpush3.bf16.msra.mxu0 %v2083_v15 }
 0x385   :  { %v2235_v32 = vpop.eup %2234 }
 0x386   :  { %v423_v38 = vmul.f32 %v2235_v32, %v2219_v58 }
 0x387   :  { %1930 = vmatmul.mubr.msk.f32.vlgmr.msra.gmra.mrb[2].mxu0 %vm336_vm2, %v418_v20  ;;  %v1735_v20 = vld [vmem:[%s2831_s5 + $0x20] sm:$0xff] }
 0x388   :  { %1932 = vmatprep.mubr.msk.f32.mxu0 %vm336_vm2, %v419_v22  ;;  %v2186_v22 = vpack.i.bf16 %v1736_v21, %v1735_v20  ;;  %v2095_v24 = vpack.c.bf16 %v1736_v21, %v1735_v20 }
 0x389   :  { %v2237_v36 = vpop.eup %2236 }
 0x38a   :  { %v424_v39 = vmul.f32 %v2237_v36, %v2221_v60  ;;  %2096 = vmatprep.subr.bf16.mxu0 %v2095_v24 }
 0x38b   :  { %1933 = vmatmul.mubr.msk.f32.gmra.mrb[4].mxu0 %vm336_vm2, %v420_v27 }
 0x38c   :  { %1935 = vmatprep.mubr.msk.f32.mxu0 %vm336_vm2, %v421_v31  ;;  %2098 = vmatpush3.bf16.msra.mxu0 %v2095_v24 }
 0x38f   :  { %1936 = vmatmul.mubr.msk.f32.gmra.mrb[6].mxu0 %vm336_vm2, %v422_v35 }
 0x390   :  { %1938 = vmatprep.mubr.msk.f32.mxu0 %vm336_vm2, %v423_v38 }
 0x393   :  { %1939 = vmatmul.mubr.msk.f32.gmra.mrb[8].mxu0 %vm336_vm2, %v424_v39 }
 0x394   :  { %1960 = vmatprep.mubr.msk.f32.mxu0 %vm107_vm0, %v38_v44 }
 0x45a   :  { %v1931_v46 = vpop.f32.mrb[2].mxu0 }
 0x45b   :  { %v521_v47 = vpop.f32.mrb[3].mxu0  ;;  %v561_v49 = vmul.f32 %v1931_v46, %v2428_v25  ;;  %v40_v46 = vld [vmem:[%s2827_s1 + $0x10] sm:$0xff] }
 0x45c   :  { %v560_v52 = vmul.f32 %v521_v47, %v2407_v16  ;;  %v41_v47 = vld [vmem:[%s2827_s1 + $0x18] sm:$0xff] }
 0x45e   :  { %v1934_v48 = vpop.f32.mrb[4].mxu0 }
 0x45f   :  { %v563_v50 = vmul.f32 %v1934_v48, %v2440_v29  ;;  %v531_v51 = vpop.f32.mrb[5].mxu0  ;;  %v702_v48 = vsub.s32 1, %v2393_v9 }
 0x460   :  { %v562_v53 = vmul.f32 %v531_v51, %v2433_v26 }
 0x461   :  { %v569_v54 = vadd.f32 %v563_v50, %v561_v49  ;;  %v703_v49 = vrot.slane %v2399_v11, %v702_v48 }
 0x462   :  { %v568_v55 = vadd.f32 %v562_v53, %v560_v52  ;;  %v1937_v56 = vpop.f32.mrb[6].mxu0 }
 0x463   :  { %v565_v57 = vmul.f32 %v1937_v56, %v2454_v33  ;;  %v541_v58 = vpop.f32.mrb[7].mxu0 }
 0x464   :  { %v564_v59 = vmul.f32 %v541_v58, %v2446_v30 }
 0x465   :  { %v571_v60 = vadd.f32 %v569_v54, %v565_v57 }
 0x466   :  { %v570_v61 = vadd.f32 %v568_v55, %v564_v59  ;;  %v1940_v62 = vpop.f32.mrb[8].mxu0 }
 0x467   :  { %v567_v63 = vmul.f32 %v1940_v62, %v2468_v37  ;;  %v551_v0 = vpop.f32.mrb[9].mxu0 }
 0x468   :  { %v566_v1 = vmul.f32 %v551_v0, %v2460_v34  ;;  %v690_v0 = vsub.s32 4, %v2393_v9 }
 0x469   :  { %v573_v2 = vadd.f32 %v571_v60, %v567_v63 }
 0x46a   :  { %v572_v3 = vadd.f32 %v570_v61, %v566_v1 }
 0x46c   :  { %1949 = vmatprep.mubr.msk.f32.mxu1 %vm107_vm0, %v572_v3  ;;  %v691_v3 = vrot.slane %v2399_v11, %v690_v0 }
 0x46d   :  { %1950 = vmatmul.mubr.msk.f32.vlgmr.msra.gmra.mrb[8].mxu1 %vm107_vm0, %v573_v2 }
 0x540   :  { %v1951_v8 = vpop.f32.mrb[8].mxu1 }
 0x541   :  { %v650_v12 = vpop.f32.mrb[9].mxu1  ;;  %v656_v13 = vadd.f32 %v1951_v8, %v577_v6 }
 0x542   :  { %v651_v14 = vadd.f32 %v650_v12, %v577_v6  ;;  %v696_v6 = vsub.s32 5, %v2393_v9 }
 0x543   :  { %v660_v17 = vadd.f32 %v656_v13, %v2389_v7  ;;  %v1738_v7 = vld [vmem:[%s2831_s5 + $0x38] sm:$0xff] }
 0x544   :  { %v659_v18 = vadd.f32 %v651_v14, %v2382_v5  ;;  %v1737_v5 = vld [vmem:[%s2831_s5 + $0x30] sm:$0xff]  ;;  %v697_v14 = vrot.slane %v2399_v11, %v696_v6  ;;  %v54_v6 = vld [vmem:[%s2829_s3 + $0x20] sm:$0xff] }
 0x545   :  { %v664_v19 = vsel %vm107_vm0, %v660_v17, 0.0  ;;  %v2191_v27 = vpack.i.bf16 %v1738_v7, %v1737_v5  ;;  %v2099_v43 = vpack.c.bf16 %v1738_v7, %v1737_v5 }
 0x546   :  { %v661_v15 = vsel %vm107_vm0, %v659_v18, 0.0 }
 0x547   :  { %662 = vadd.xlane.f32.xlu1 %v661_v15  ;;  %2192 = vrot.lane.b32.xlu0 %v2191_v27, %s2308_s2 }
 0x548   :  { %2100 = vmatprep.subr.bf16.mxu0 %v2099_v43 }
 0x549   :  { %2102 = vmatpush3.bf16.msra.mxu0 %v2099_v43 }
 0x54b   :  { %665 = vadd.xlane.f32.xlu1 %v664_v19  ;;  %818 = vrot.lane.b32.xlu0 %v703_v49, %s2308_s2 }
 0x54c   :  { %1961 = vmatmul.mubr.msk.f32.vlgmr.msra.gmra.mrb[10].mxu0 %vm107_vm0, %v39_v45 }
 0x54d   :  { %1963 = vmatprep.mubr.msk.f32.mxu0 %vm107_vm0, %v40_v46 }
 0x550   :  { %1964 = vmatmul.mubr.msk.f32.gmra.mrb[12].mxu0 %vm107_vm0, %v41_v47 }
 0x5b9   :  { %v2193_v54 = vpop.permute.xlu0 %2192 }
 0x5ba   :  { %v2195_v57 = vunpack.i.h.bf16 %v2193_v54  ;;  %v2194_v58 = vunpack.i.l.bf16 %v2193_v54 }
 0x5bc   :  { %v2107_v63 = vpack.c.bf16 %v2195_v57, %v2194_v58 }
 0x5d4   :  { %v663_v28 = vpop.xlane.xlu1 %662 }
 0x5d5   :  { %v668_v31 = vmul.f32 0.03125, %v663_v28 }
 0x5d7   :  { %v670_v36 = vsub.f32 %v659_v18, %v668_v31 }
 0x5d8   :  { %v666_v32 = vpop.xlane.xlu1 %665 }
 0x5d9   :  { %v669_v35 = vmul.f32 0.03125, %v666_v32  ;;  %v672_v41 = vmul.f32 %v670_v36, %v670_v36 }
 0x5db   :  { %v671_v38 = vsub.f32 %v660_v17, %v669_v35  ;;  %v674_v42 = vsel %vm107_vm0, %v672_v41, 0.0  ;;  %v819_v35 = vpop.permute.xlu0 %818 }
 0x5dd   :  { %v673_v39 = vmul.f32 %v671_v38, %v671_v38 }
 0x5df   :  { %v677_v40 = vsel %vm107_vm0, %v673_v39, 0.0 }
 0x5e0   :  { %678 = vadd.xlane.f32.xlu1 %v677_v40 }
 0x5e4   :  { %675 = vadd.xlane.f32.xlu1 %v674_v42 }
 0x5f5   :  { %2187 = vrot.lane.b32.xlu1 %v2186_v22, %s2308_s2 }
 0x61f   :  { %v1962_v19 = vpop.f32.mrb[10].mxu0 }
 0x620   :  { %v2603_v20 = vadd.f32 %v1962_v19, %v703_v49  ;;  %v782_v21 = vpop.f32.mrb[11].mxu0 }
 0x621   :  { %v2605_v22 = vadd.f32 %v782_v21, %v703_v49 }
 0x623   :  { %v2196_v11 = vpack.i.bf16 %v2603_v20, %v2605_v22  ;;  %v2111_v5 = vpack.c.bf16 %v2603_v20, %v2605_v22  ;;  %v1965_v7 = vpop.f32.mrb[12].mxu0 }
 0x624   :  { %v2615_v24 = vadd.f32 %v1965_v7, %v703_v49  ;;  %v792_v27 = vpop.f32.mrb[13].mxu0 }
 0x625   :  { %2113 = vmatprep.subr.msk.bf16.mxu0 %vm2417_vm1, %v2111_v5  ;;  %v2617_v28 = vadd.f32 %v792_v27, %v703_v49  ;;  %v51_v49 = vld [vmem:[%s2829_s3 + $0x8] sm:$0xff] }
 0x626   :  { %2116 = vmatpush3.bf16.xpose.msk.msra.mxu0 %vm2417_vm1, %v2111_v5  ;;  %v56_v5 = vld [vmem:[%s2829_s3 + $0x30] sm:$0xff] }
 0x627   :  { %v2201_v31 = vpack.i.bf16 %v2615_v24, %v2617_v28  ;;  %v2117_v32 = vpack.c.bf16 %v2615_v24, %v2617_v28 }
 0x629   :  { %2119 = vmatprep.subr.msk.bf16.mxu0 %vm2417_vm1, %v2117_v32 }
 0x62e   :  { %2122 = vmatpush3.bf16.xpose.msk.msra.mxu0 %vm2417_vm1, %v2117_v32 }
 0x66d   :  { %v679_v50 = vpop.xlane.xlu1 %678 }
 0x66e   :  { %v681_v51 = vmul.f32 0.03125, %v679_v50  ;;  %v50_v50 = vld [vmem:[%s2829_s3] sm:$0xff] }
 0x670   :  { %v683_v52 = vadd.f32 1e-05, %v681_v51 }
 0x671   :  { %v676_v53 = vpop.xlane.xlu1 %675 }
 0x672   :  { %2238 = vrsqrt.f32 %v683_v52  ;;  %v680_v55 = vmul.f32 0.03125, %v676_v53 }
 0x674   :  { %v682_v56 = vadd.f32 1e-05, %v680_v55  ;;  %v53_v55 = vld [vmem:[%s2829_s3 + $0x18] sm:$0xff] }
 0x675   :  { %v2188_v59 = vpop.permute.xlu1 %2187 }
 0x676   :  { %2240 = vrsqrt.f32 %v682_v56  ;;  %v2190_v60 = vunpack.i.h.bf16 %v2188_v59  ;;  %v2189_v61 = vunpack.i.l.bf16 %v2188_v59 }
 0x678   :  { %v2103_v62 = vpack.c.bf16 %v2190_v60, %v2189_v61  ;;  %v52_v61 = vld [vmem:[%s2829_s3 + $0x10] sm:$0xff] }
 0x67a   :  { %2104 = vmatprep.subr.bf16.mxu1 %v2103_v62 }
 0x67b   :  { %2106 = vmatpush3.bf16.msra.mxu1 %v2103_v62  ;;  %v55_v62 = vld [vmem:[%s2829_s3 + $0x28] sm:$0xff] }
 0x67c   :  { %v2239_v1 = vpop.eup %2238  ;;  %2108 = vmatprep.subr.bf16.mxu1 %v2107_v63 }
 0x67d   :  { %v687_v2 = vmul.f32 %v2239_v1, %v671_v38 }
 0x67f   :  { %2110 = vmatpush3.bf16.msra.mxu1 %v2107_v63  ;;  %v693_v13 = vmul.f32 %v691_v3, %v687_v2 }
 0x680   :  { %v2241_v8 = vpop.eup %2240 }
 0x681   :  { %v686_v12 = vmul.f32 %v2241_v8, %v670_v36  ;;  %v2597_v17 = vadd.f32 %v697_v14, %v693_v13  ;;  %v57_v8 = vld [vmem:[%s2829_s3 + $0x38] sm:$0xff] }
 0x683   :  { %v692_v18 = vmul.f32 %v691_v3, %v686_v12 }
 0x685   :  { %v2595_v15 = vadd.f32 %v697_v14, %v692_v18 }
 0x687   :  { %1974 = vmatprep.mubr.msk.f32.mxu1 %vm107_vm0, %v2595_v15 }
 0x688   :  { %1975 = vmatmul.mubr.msk.f32.vlgmr.msra.gmra.mrb[10].mxu1 %vm107_vm0, %v2597_v17 }
 0x75b   :  { %v1976_v36 = vpop.f32.mrb[10].mxu1 }
 0x75c   :  { %v899_v38 = vadd.f32 %v1976_v36, %v819_v35  ;;  %v893_v39 = vpop.f32.mrb[11].mxu1 }
 0x75d   :  { %v894_v40 = vadd.f32 %v893_v39, %v819_v35 }
 0x75e   :  { %v903_v42 = vmul.f32 %v899_v38, %v2428_v25  ;;  %v905_v23 = vmul.f32 %v899_v38, %v2440_v29  ;;  %v907_v45 = vmul.f32 %v899_v38, %v2454_v33  ;;  %v909_v47 = vmul.f32 %v899_v38, %v2468_v37 }
 0x75f   :  { %v902_v41 = vmul.f32 %v894_v40, %v2407_v16  ;;  %v904_v43 = vmul.f32 %v894_v40, %v2433_v26  ;;  %v906_v44 = vmul.f32 %v894_v40, %v2446_v30  ;;  %v908_v46 = vmul.f32 %v894_v40, %v2460_v34 }
 0x761   :  { %1985 = vmatprep.mubr.msk.f32.mxu0 %vm107_vm0, %v902_v41 }
 0x762   :  { %1986 = vmatmul.mubr.msk.f32.vlgmr.msra.gmra.mrb[14].mxu0 %vm107_vm0, %v903_v42 }
 0x763   :  { %1988 = vmatprep.mubr.msk.f32.mxu0 %vm107_vm0, %v904_v43 }
 0x766   :  { %1989 = vmatmul.mubr.msk.f32.gmra.mrb[16].mxu0 %vm107_vm0, %v905_v23 }
 0x767   :  { %1991 = vmatprep.mubr.msk.f32.mxu0 %vm107_vm0, %v906_v44 }
 0x76a   :  { %1992 = vmatmul.mubr.msk.f32.gmra.mrb[18].mxu0 %vm107_vm0, %v907_v45 }
 0x76b   :  { %1994 = vmatprep.mubr.msk.f32.mxu0 %vm107_vm0, %v908_v46 }
 0x76e   :  { %1995 = vmatmul.mubr.msk.f32.gmra.mrb[20].mxu0 %vm107_vm0, %v909_v47 }
 0x835   :  { %v1987_v51 = vpop.f32.mrb[14].mxu0 }
 0x836   :  { %v1018_v52 = vadd.f32 %v1987_v51, %v51_v49  ;;  %v1012_v53 = vpop.f32.mrb[15].mxu0 }
 0x837   :  { %v1013_v54 = vadd.f32 %v1012_v53, %v50_v50 }
 0x838   :  { %v1054_v56 = vsel %vm107_vm0, %v1018_v52, -inf }
 0x839   :  { %1055 = vmax.xlane.f32.xlu1 %v1054_v56  ;;  %v1990_v57 = vpop.f32.mrb[16].mxu0  ;;  %v1051_v58 = vsel %vm107_vm0, %v1013_v54, -inf }
 0x83a   :  { %v1028_v59 = vadd.f32 %v1990_v57, %v53_v55  ;;  %v1022_v60 = vpop.f32.mrb[17].mxu0  ;;  %1052 = vmax.xlane.f32.xlu0 %v1051_v58 }
 0x83b   :  { %v1023_v0 = vadd.f32 %v1022_v60, %v52_v61 }
 0x83c   :  { %v1060_v63 = vsel %vm107_vm0, %v1028_v59, -inf }
 0x83d   :  { %v1993_v1 = vpop.f32.mrb[18].mxu0  ;;  %v1057_v18 = vsel %vm107_vm0, %v1023_v0, -inf }
 0x83e   :  { %v1038_v2 = vadd.f32 %v1993_v1, %v55_v62  ;;  %v1032_v3 = vpop.f32.mrb[19].mxu0  ;;  %1061 = vmax.xlane.f32.xlu0 %v1060_v63 }
 0x83f   :  { %v1033_v13 = vadd.f32 %v1032_v3, %v54_v6 }
 0x840   :  { %v1066_v12 = vsel %vm107_vm0, %v1038_v2, -inf }
 0x841   :  { %1067 = vmax.xlane.f32.xlu1 %v1066_v12  ;;  %v1996_v14 = vpop.f32.mrb[20].mxu0  ;;  %v1063_v32 = vsel %vm107_vm0, %v1033_v13, -inf }
 0x842   :  { %v1048_v19 = vadd.f32 %v1996_v14, %v57_v8  ;;  %v1042_v21 = vpop.f32.mrb[21].mxu0  ;;  %1058 = vmax.xlane.f32.xlu0 %v1057_v18 }
 0x843   :  { %v1043_v27 = vadd.f32 %v1042_v21, %v56_v5 }
 0x844   :  { %v1072_v7 = vsel %vm107_vm0, %v1048_v19, -inf }
 0x845   :  { %1073 = vmax.xlane.f32.xlu1 %v1072_v7  ;;  %v1069_v35 = vsel %vm107_vm0, %v1043_v27, -inf }
 0x846   :  { %1064 = vmax.xlane.f32.xlu0 %v1063_v32 }
 0x84a   :  { %1070 = vmax.xlane.f32.xlu0 %v1069_v35 }
 0x8c6   :  { %v1056_v36 = vpop.xlane.xlu1 %1055 }
 0x8c7   :  { %v1076_v38 = vsub.f32 %v1018_v52, %v1056_v36  ;;  %v1053_v39 = vpop.xlane.xlu0 %1052 }
 0x8c8   :  { %v1075_v40 = vsub.f32 %v1013_v54, %v1053_v39 }
 0x8c9   :  { %v1085_v41 = vmul.f32 1.442695, %v1076_v38 }
 0x8ca   :  { %v1083_v42 = vmul.f32 1.442695, %v1075_v40 }
 0x8cb   :  { %2242 = vpow2.f32 %v1085_v41  ;;  %v1062_v43 = vpop.xlane.xlu0 %1061 }
 0x8cc   :  { %2244 = vpow2.f32 %v1083_v42  ;;  %v1078_v23 = vsub.f32 %v1028_v59, %v1062_v43 }
 0x8ce   :  { %v1089_v44 = vmul.f32 1.442695, %v1078_v23  ;;  %v1068_v45 = vpop.xlane.xlu1 %1067 }
 0x8cf   :  { %v1080_v46 = vsub.f32 %v1038_v2, %v1068_v45  ;;  %v1059_v47 = vpop.xlane.xlu0 %1058 }
 0x8d0   :  { %2246 = vpow2.f32 %v1089_v44  ;;  %v1077_v49 = vsub.f32 %v1023_v0, %v1059_v47 }
 0x8d1   :  { %v1093_v50 = vmul.f32 1.442695, %v1080_v46 }
 0x8d2   :  { %v1087_v51 = vmul.f32 1.442695, %v1077_v49  ;;  %v1074_v53 = vpop.xlane.xlu1 %1073 }
 0x8d3   :  { %2248 = vpow2.f32 %v1093_v50  ;;  %v1082_v55 = vsub.f32 %v1048_v19, %v1074_v53  ;;  %v1065_v52 = vpop.xlane.xlu0 %1064 }
 0x8d4   :  { %2250 = vpow2.f32 %v1087_v51  ;;  %v1079_v54 = vsub.f32 %v1033_v13, %v1065_v52 }
 0x8d5   :  { %v2675_v56 = vpop.eup %2242  ;;  %v1097_v57 = vmul.f32 1.442695, %v1082_v55 }
 0x8d6   :  { %v2245_v58 = vpop.eup %2244  ;;  %v1091_v60 = vmul.f32 1.442695, %v1079_v54  ;;  %v1102_v59 = vsel %vm107_vm0, %v2675_v56, 0.0 }
 0x8d7   :  { %2252 = vpow2.f32 %v1097_v57  ;;  %1103 = vadd.xlane.f32.xlu1 %v1102_v59  ;;  %v1071_v61 = vpop.xlane.xlu0 %1070  ;;  %v1099_v62 = vsel %vm107_vm0, %v2245_v58, 0.0  ;;  %v1740_v59 = vld [vmem:[%s2832_s6 + $0x28] sm:$0xff] }
 0x8d8   :  { %2254 = vpow2.f32 %v1091_v60  ;;  %v1081_v63 = vsub.f32 %v1043_v27, %v1071_v61  ;;  %1100 = vadd.xlane.f32.xlu0 %v1099_v62  ;;  %v1739_v60 = vld [vmem:[%s2832_s6 + $0x20] sm:$0xff]  ;;  %v1741_v62 = vld [vmem:[%s2832_s6 + $0x30] sm:$0xff] }
 0x8d9   :  { %v2131_v61 = vpack.c.bf16 %v1740_v59, %v1739_v60  ;;  %v97_v59 = vld [vmem:[%s2833_s7 + $0x40] sm:$0xff] }
 0x8da   :  { %v2247_v0 = vpop.eup %2246  ;;  %v1095_v1 = vmul.f32 1.442695, %v1081_v63  ;;  %v1742_v63 = vld [vmem:[%s2832_s6 + $0x38] sm:$0xff] }
 0x8db   :  { %v1108_v2 = vsel %vm107_vm0, %v2247_v0, 0.0 }
 0x8dc   :  { %2256 = vpow2.f32 %v1095_v1  ;;  %1109 = vadd.xlane.f32.xlu1 %v1108_v2 }
 0x8dd   :  { %v2249_v3 = vpop.eup %2248 }
 0x8de   :  { %v2251_v6 = vpop.eup %2250  ;;  %v1114_v8 = vsel %vm107_vm0, %v2249_v3, 0.0 }
 0x8df   :  { %v1105_v12 = vsel %vm107_vm0, %v2251_v6, 0.0 }
 0x8e0   :  { %1115 = vadd.xlane.f32.xlu1 %v1114_v8  ;;  %1106 = vadd.xlane.f32.xlu0 %v1105_v12 }
 0x8e1   :  { %v2253_v13 = vpop.eup %2252 }
 0x8e2   :  { %v2255_v14 = vpop.eup %2254  ;;  %v1120_v18 = vsel %vm107_vm0, %v2253_v13, 0.0 }
 0x8e3   :  { %v1111_v19 = vsel %vm107_vm0, %v2255_v14, 0.0 }
 0x8e4   :  { %1121 = vadd.xlane.f32.xlu1 %v1120_v18  ;;  %1112 = vadd.xlane.f32.xlu0 %v1111_v19 }
 0x8e6   :  { %v2257_v21 = vpop.eup %2256 }
 0x8e7   :  { %v1117_v5 = vsel %vm107_vm0, %v2257_v21, 0.0 }
 0x8e8   :  { %1118 = vadd.xlane.f32.xlu0 %v1117_v5 }
 0x8f5   :  { %2202 = vrot.lane.b32.xlu1 %v2201_v31, %s2307_s28 }
 0x8fe   :  { %2197 = vrot.lane.b32.xlu0 %v2196_v11, %s2307_s28 }
 0x964   :  { %v1104_v7 = vpop.xlane.xlu1 %1103 }
 0x965   :  { %v1101_v27 = vpop.xlane.xlu0 %1100 }
 0x966   :  { %2258 = vrcp.f32 %v1101_v27 }
 0x967   :  { %2260 = vrcp.f32 %v1104_v7 }
 0x969   :  { %v1110_v32 = vpop.xlane.xlu1 %1109 }
 0x96d   :  { %v1116_v35 = vpop.xlane.xlu1 %1115  ;;  %v1107_v36 = vpop.xlane.xlu0 %1106 }
 0x96e   :  { %2262 = vrcp.f32 %v1107_v36 }
 0x96f   :  { %2264 = vrcp.f32 %v1110_v32 }
 0x970   :  { %v2259_v38 = vpop.eup %2258 }
 0x971   :  { %v1122_v39 = vpop.xlane.xlu1 %1121  ;;  %v1113_v40 = vpop.xlane.xlu0 %1112  ;;  %v1131_v41 = vmul.f32 %v2259_v38, %v2245_v58 }
 0x972   :  { %2266 = vrcp.f32 %v1113_v40  ;;  %v2261_v44 = vpop.eup %2260 }
 0x973   :  { %2005 = vmatprep.mubr.msk.f32.mxu1 %vm107_vm0, %v1131_v41  ;;  %2268 = vrcp.f32 %v1116_v35  ;;  %v1132_v46 = vmul.f32 %v2261_v44, %v2675_v56 }
 0x975   :  { %v1119_v42 = vpop.xlane.xlu0 %1118  ;;  %v2203_v24 = vpop.permute.xlu1 %2202 }
 0x976   :  { %v2205_v31 = vunpack.i.h.bf16 %v2203_v24  ;;  %v2204_v20 = vunpack.i.l.bf16 %v2203_v24  ;;  %2270 = vrcp.f32 %v1119_v42 }
 0x977   :  { %2272 = vrcp.f32 %v1122_v39 }
 0x978   :  { %v2127_v23 = vpack.c.bf16 %v2205_v31, %v2204_v20  ;;  %v2263_v45 = vpop.eup %2262 }
 0x979   :  { %v2198_v28 = vpop.permute.xlu0 %2197  ;;  %v2265_v47 = vpop.eup %2264  ;;  %v1133_v49 = vmul.f32 %v2263_v45, %v2251_v6 }
 0x97a   :  { %v2200_v22 = vunpack.i.h.bf16 %v2198_v28  ;;  %v2199_v11 = vunpack.i.l.bf16 %v2198_v28  ;;  %v1134_v51 = vmul.f32 %v2265_v47, %v2247_v0  ;;  %v2135_v0 = vpack.c.bf16 %v1742_v63, %v1741_v62 }
 0x97c   :  { %v2123_v43 = vpack.c.bf16 %v2200_v22, %v2199_v11  ;;  %v2267_v50 = vpop.eup %2266 }
 0x97d   :  { %v2269_v53 = vpop.eup %2268  ;;  %v1135_v55 = vmul.f32 %v2267_v50, %v2255_v14 }
 0x97e   :  { %2124 = vmatprep.subr.bf16.mxu1 %v2123_v43  ;;  %v1136_v54 = vmul.f32 %v2269_v53, %v2249_v3  ;;  %v92_v53 = vld [vmem:[%s2833_s7 + $0x18] sm:$0xff] }
 0x97f   :  { %2126 = vmatpush3.bf16.msra.mxu1 %v2123_v43 }
 0x980   :  { %2128 = vmatprep.subr.bf16.mxu1 %v2127_v23  ;;  %v2271_v52 = vpop.eup %2270 }
 0x981   :  { %v2273_v57 = vpop.eup %2272  ;;  %v1137_v58 = vmul.f32 %v2271_v52, %v2257_v21  ;;  %v93_v52 = vld [vmem:[%s2833_s7 + $0x20] sm:$0xff] }
 0x982   :  { %v1138_v56 = vmul.f32 %v2273_v57, %v2253_v13  ;;  %v95_v57 = vld [vmem:[%s2833_s7 + $0x30] sm:$0xff] }
 0x983   :  { %2130 = vmatpush3.bf16.msra.mxu1 %v2127_v23 }
 0x984   :  { %2132 = vmatprep.subr.bf16.mxu1 %v2131_v61 }
 0x986   :  { %2006 = vmatmul.mubr.msk.f32.vlgmr.msra.gmra.mrb[12].mxu1 %vm107_vm0, %v1132_v46 }
 0x987   :  { %2008 = vmatprep.mubr.msk.f32.mxu1 %vm107_vm0, %v1133_v49  ;;  %2134 = vmatpush3.bf16.msra.mxu1 %v2131_v61  ;;  %v90_v49 = vld [vmem:[%s2833_s7 + $0x8] sm:$0xff] }
 0x988   :  { %2136 = vmatprep.subr.bf16.mxu1 %v2135_v0  ;;  %v98_v61 = vld [vmem:[%s2833_s7 + $0x48] sm:$0xff] }
 0x989   :  { %v2155_v62 = vpack.c.bf16 %v98_v61, %v97_v59 }
 0x98a   :  { %2009 = vmatmul.mubr.msk.f32.gmra.mrb[14].mxu1 %vm107_vm0, %v1134_v51  ;;  %v91_v51 = vld [vmem:[%s2833_s7 + $0x10] sm:$0xff] }
 0x98b   :  { %2011 = vmatprep.mubr.msk.f32.mxu1 %vm107_vm0, %v1135_v55  ;;  %2138 = vmatpush3.bf16.msra.mxu1 %v2135_v0  ;;  %v2143_v55 = vpack.c.bf16 %v92_v53, %v91_v51  ;;  %v67_v51 = vld [vmem:[%s2835_s9 + $0x8] sm:$0xff] }
 0x98e   :  { %2012 = vmatmul.mubr.msk.f32.gmra.mrb[16].mxu1 %vm107_vm0, %v1136_v54  ;;  %v94_v54 = vld [vmem:[%s2833_s7 + $0x28] sm:$0xff] }
 0x98f   :  { %2014 = vmatprep.mubr.msk.f32.mxu1 %vm107_vm0, %v1137_v58  ;;  %v2147_v58 = vpack.c.bf16 %v94_v54, %v93_v52  ;;  %v69_v52 = vld [vmem:[%s2835_s9 + $0x18] sm:$0xff] }
 0x991   :  { %2148 = vmatprep.subr.bf16.mxu1 %v2147_v58 }
 0x992   :  { %2015 = vmatmul.mubr.msk.f32.gmra.mrb[18].mxu1 %vm107_vm0, %v1138_v56  ;;  %v96_v56 = vld [vmem:[%s2833_s7 + $0x38] sm:$0xff] }
 0x993   :  { %v2151_v60 = vpack.c.bf16 %v96_v56, %v95_v57 }
 0xa59   :  { %v2007_v1 = vpop.f32.mrb[12].mxu1 }
 0xa5a   :  { %v1241_v2 = vpop.f32.mrb[13].mxu1  ;;  %v1281_v6 = vmul.f32 %v2007_v1, %v2428_v25 }
 0xa5b   :  { %v1280_v13 = vmul.f32 %v1241_v2, %v2407_v16 }
 0xa5d   :  { %v2010_v3 = vpop.f32.mrb[14].mxu1 }
 0xa5e   :  { %v1283_v8 = vmul.f32 %v2010_v3, %v2440_v29  ;;  %v1251_v12 = vpop.f32.mrb[15].mxu1 }
 0xa5f   :  { %v1282_v14 = vmul.f32 %v1251_v12, %v2433_v26  ;;  %v1296_v26 = vsub.s32 3, %v2393_v9  ;;  %v1415_v12 = vsub.s32 7, %v2393_v9 }
 0xa60   :  { %v1289_v18 = vadd.f32 %v1283_v8, %v1281_v6  ;;  %v1409_v8 = vsub.s32 6, %v2393_v9 }
 0xa61   :  { %v1288_v19 = vadd.f32 %v1282_v14, %v1280_v13  ;;  %v2013_v21 = vpop.f32.mrb[16].mxu1 }
 0xa62   :  { %v1285_v5 = vmul.f32 %v2013_v21, %v2454_v33  ;;  %v1261_v7 = vpop.f32.mrb[17].mxu1 }
 0xa63   :  { %v1284_v27 = vmul.f32 %v1261_v7, %v2446_v30  ;;  %v2729_v30 = vld [vmem:[%s2834_s8] sm:$0xff] }
 0xa64   :  { %v1291_v32 = vadd.f32 %v1289_v18, %v1285_v5  ;;  %v1297_v33 = vrot.slane %v2729_v30, %v1296_v26  ;;  %v1410_v13 = vrot.slane %v2729_v30, %v1409_v8  ;;  %v1416_v5 = vrot.slane %v2729_v30, %v1415_v12 }
 0xa65   :  { %v1290_v35 = vadd.f32 %v1288_v19, %v1284_v27  ;;  %v2016_v36 = vpop.f32.mrb[18].mxu1 }
 0xa66   :  { %v1287_v25 = vmul.f32 %v2016_v36, %v2468_v37  ;;  %v1271_v38 = vpop.f32.mrb[19].mxu1  ;;  %v99_v36 = vld [vmem:[%s2833_s7 + $0x50] sm:$0xff] }
 0xa67   :  { %v1286_v29 = vmul.f32 %v1271_v38, %v2460_v34 }
 0xa68   :  { %v1293_v39 = vadd.f32 %v1291_v32, %v1287_v25  ;;  %v100_v25 = vld [vmem:[%s2833_s7 + $0x58] sm:$0xff] }
 0xa69   :  { %v1292_v16 = vadd.f32 %v1290_v35, %v1286_v29  ;;  %v2159_v38 = vpack.c.bf16 %v100_v25, %v99_v36  ;;  %v102_v29 = vld [vmem:[%s2834_s8 + $0x8] sm:$0xf] }
 0xa6b   :  { %2025 = vmatprep.mubr.msk.f32.mxu1 %vm107_vm0, %v1292_v16 }
 0xa6c   :  { %2026 = vmatmul.mubr.msk.f32.vlgmr.msra.gmra.mrb[20].mxu1 %vm107_vm0, %v1293_v39  ;;  %v1422_v39 = vrot.slane %v102_v29, %v576_v4 }
 0xa6d   :  { %2150 = vmatpush3.bf16.msra.mxu1 %v2147_v58 }
 0xa6e   :  { %2152 = vmatprep.subr.bf16.mxu1 %v2151_v60 }
 0xa71   :  { %2154 = vmatpush3.bf16.msra.mxu1 %v2151_v60 }
 0xa72   :  { %2156 = vmatprep.subr.bf16.mxu1 %v2155_v62 }
 0xa75   :  { %2158 = vmatpush3.bf16.msra.mxu1 %v2155_v62  ;;  %v1623_v62 = vrot.slane %v102_v29, %v105_v10 }
 0xa76   :  { %2160 = vmatprep.subr.bf16.mxu1 %v2159_v38 }
 0xa79   :  { %2162 = vmatpush3.bf16.msra.mxu1 %v2159_v38 }
 0xb3f   :  { %v2027_v37 = vpop.f32.mrb[20].mxu1 }
 0xb40   :  { %v1376_v40 = vadd.f32 %v2027_v37, %v1297_v33  ;;  %v1370_v34 = vpop.f32.mrb[21].mxu1 }
 0xb41   :  { %v1371_v41 = vadd.f32 %v1370_v34, %v1297_v33 }
 0xb42   :  { %v1380_v42 = vadd.f32 %v1376_v40, %v2597_v17 }
 0xb43   :  { %v1379_v24 = vadd.f32 %v1371_v41, %v2595_v15  ;;  %v89_v15 = vld [vmem:[%s2833_s7] sm:$0xff]  ;;  %v1509_v41 = vrot.slane %v102_v29, %v1296_v26 }
 0xb44   :  { %v1384_v28 = vsel %vm107_vm0, %v1380_v42, 0.0  ;;  %v2139_v50 = vpack.c.bf16 %v90_v49, %v89_v15 }
 0xb45   :  { %1385 = vadd.xlane.f32.xlu0 %v1384_v28  ;;  %v1381_v31 = vsel %vm107_vm0, %v1379_v24, 0.0 }
 0xb46   :  { %1382 = vadd.xlane.f32.xlu1 %v1381_v31  ;;  %2140 = vmatprep.subr.bf16.mxu0 %v2139_v50 }
 0xb47   :  { %2142 = vmatpush3.bf16.msra.mxu0 %v2139_v50  ;;  %v66_v50 = vld [vmem:[%s2835_s9] sm:$0xff] }
 0xb48   :  { %2144 = vmatprep.subr.bf16.mxu0 %v2143_v55  ;;  %v2163_v53 = vpack.c.bf16 %v67_v51, %v66_v50 }
 0xb4b   :  { %2146 = vmatpush3.bf16.msra.mxu0 %v2143_v55  ;;  %v68_v55 = vld [vmem:[%s2835_s9 + $0x10] sm:$0xff] }
 0xb4c   :  { %2164 = vmatprep.subr.bf16.mxu0 %v2163_v53  ;;  %v2167_v54 = vpack.c.bf16 %v69_v52, %v68_v55 }
 0xbd2   :  { %v1386_v20 = vpop.xlane.xlu0 %1385 }
 0xbd3   :  { %v1388_v22 = vmul.f32 0.03125, %v1386_v20  ;;  %v1383_v11 = vpop.xlane.xlu1 %1382 }
 0xbd4   :  { %v1387_v43 = vmul.f32 0.03125, %v1383_v11 }
 0xbd5   :  { %v1390_v23 = vsub.f32 %v1380_v42, %v1388_v22 }
 0xbd6   :  { %v1389_v44 = vsub.f32 %v1379_v24, %v1387_v43 }
 0xbd7   :  { %v1392_v45 = vmul.f32 %v1390_v23, %v1390_v23 }
 0xbd8   :  { %v1391_v46 = vmul.f32 %v1389_v44, %v1389_v44 }
 0xbd9   :  { %v1396_v47 = vsel %vm107_vm0, %v1392_v45, 0.0 }
 0xbda   :  { %1397 = vadd.xlane.f32.xlu1 %v1396_v47  ;;  %v1393_v17 = vsel %vm107_vm0, %v1391_v46, 0.0 }
 0xbdb   :  { %1394 = vadd.xlane.f32.xlu0 %v1393_v17 }
 0xc67   :  { %v1398_v63 = vpop.xlane.xlu1 %1397 }
 0xc68   :  { %v1400_v0 = vmul.f32 0.03125, %v1398_v63  ;;  %v1395_v1 = vpop.xlane.xlu0 %1394 }
 0xc69   :  { %v1399_v2 = vmul.f32 0.03125, %v1395_v1 }
 0xc6a   :  { %v1402_v3 = vadd.f32 1e-05, %v1400_v0 }
 0xc6b   :  { %v1401_v6 = vadd.f32 1e-05, %v1399_v2 }
 0xc6c   :  { %2274 = vrsqrt.f32 %v1402_v3  ;;  %v1629_v3 = vrot.slane %v102_v29, %v702_v48 }
 0xc6d   :  { %2276 = vrsqrt.f32 %v1401_v6 }
 0xc76   :  { %v2275_v14 = vpop.eup %2274 }
 0xc77   :  { %v2277_v18 = vpop.eup %2276  ;;  %v1406_v19 = vmul.f32 %v2275_v14, %v1390_v23  ;;  %v1797_v14 = vld [vmem:[%s2835_s9 + $0x20] ss:$0 sm:$0xff] }
 0xc78   :  { %v1405_v21 = vmul.f32 %v2277_v18, %v1389_v44 }
 0xc79   :  { %v1412_v7 = vmul.f32 %v1410_v13, %v1406_v19 }
 0xc7a   :  { %v1411_v27 = vmul.f32 %v1410_v13, %v1405_v21 }
 0xc7b   :  { %v1418_v35 = vadd.f32 %v1416_v5, %v1412_v7 }
 0xc7c   :  { %v1417_v32 = vadd.f32 %v1416_v5, %v1411_v27 }
 0xc7e   :  { %2036 = vmatprep.mubr.msk.f32.mxu0 %vm107_vm0, %v1417_v32 }
 0xc7f   :  { %2037 = vmatmul.mubr.msk.f32.vlgmr.msra.gmra.mrb[22].mxu0 %vm107_vm0, %v1418_v35 }
 0xc80   :  { %2166 = vmatpush3.bf16.msra.mxu0 %v2163_v53 }
 0xc81   :  { %2168 = vmatprep.subr.bf16.mxu0 %v2167_v54 }
 0xc84   :  { %2170 = vmatpush3.bf16.msra.mxu0 %v2167_v54 }
 0xd52   :  { %v2038_v16 = vpop.f32.mrb[22].mxu0 }
 0xd53   :  { %v1501_v30 = vadd.f32 %v2038_v16, %v1422_v39  ;;  %v1495_v33 = vpop.f32.mrb[23].mxu0 }
 0xd54   :  { %v1496_v37 = vadd.f32 %v1495_v33, %v1422_v39 }
 0xd55   :  { %v1505_v34 = vmax.f32 %v1501_v30, 0.0 }
 0xd56   :  { %v1504_v40 = vmax.f32 %v1496_v37, 0.0 }
 0xd58   :  { %2055 = vmatprep.mubr.msk.f32.mxu1 %vm1510_vm3, %v1504_v40 }
 0xd59   :  { %2056 = vmatmul.mubr.msk.f32.vlgmr.msra.gmra.mrb[22].mxu1 %vm1510_vm3, %v1505_v34 }
 0xe2c   :  { %v2057_v42 = vpop.f32.mrb[22].mxu1 }
 0xe2d   :  { %v1589_v24 = vadd.f32 %v2057_v42, %v1509_v41  ;;  %v1583_v28 = vpop.f32.mrb[23].mxu1 }
 0xe2e   :  { %v1584_v31 = vadd.f32 %v1583_v28, %v1509_v41 }
 0xe2f   :  { %v1593_v20 = vadd.f32 %v1589_v24, %v1418_v35 }
 0xe30   :  { %v1592_v22 = vadd.f32 %v1584_v31, %v1417_v32 }
 0xe31   :  { %v1597_v4 = vsel %vm107_vm0, %v1593_v20, 0.0 }
 0xe32   :  { %1598 = vadd.xlane.f32.xlu1 %v1597_v4  ;;  %v1594_v11 = vsel %vm107_vm0, %v1592_v22, 0.0 }
 0xe33   :  { %1595 = vadd.xlane.f32.xlu0 %v1594_v11 }
 0xebf   :  { %v1599_v43 = vpop.xlane.xlu1 %1598 }
 0xec0   :  { %v1601_v23 = vmul.f32 0.03125, %v1599_v43  ;;  %v1596_v44 = vpop.xlane.xlu0 %1595 }
 0xec1   :  { %v1600_v45 = vmul.f32 0.03125, %v1596_v44 }
 0xec2   :  { %v1603_v46 = vsub.f32 %v1593_v20, %v1601_v23 }
 0xec3   :  { %v1602_v47 = vsub.f32 %v1592_v22, %v1600_v45 }
 0xec4   :  { %v1605_v17 = vmul.f32 %v1603_v46, %v1603_v46 }
 0xec5   :  { %v1604_v26 = vmul.f32 %v1602_v47, %v1602_v47 }
 0xec6   :  { %v1609_v15 = vsel %vm107_vm0, %v1605_v17, 0.0 }
 0xec7   :  { %1610 = vadd.xlane.f32.xlu1 %v1609_v15  ;;  %v1606_v49 = vsel %vm107_vm0, %v1604_v26, 0.0 }
 0xec8   :  { %1607 = vadd.xlane.f32.xlu0 %v1606_v49 }
 0xf54   :  { %v1611_v57 = vpop.xlane.xlu1 %1610 }
 0xf55   :  { %v1613_v58 = vmul.f32 0.03125, %v1611_v57  ;;  %v1608_v56 = vpop.xlane.xlu0 %1607 }
 0xf56   :  { %v1612_v60 = vmul.f32 0.03125, %v1608_v56 }
 0xf57   :  { %v1615_v59 = vadd.f32 1e-05, %v1613_v58 }
 0xf58   :  { %v1614_v61 = vadd.f32 1e-05, %v1612_v60 }
 0xf59   :  { %2278 = vrsqrt.f32 %v1615_v59 }
 0xf5a   :  { %2280 = vrsqrt.f32 %v1614_v61 }
 0xf63   :  { %v2279_v63 = vpop.eup %2278 }
 0xf64   :  { %v2281_v0 = vpop.eup %2280  ;;  %v1619_v1 = vmul.f32 %v2279_v63, %v1603_v46 }
 0xf65   :  { %v1618_v2 = vmul.f32 %v2281_v0, %v1602_v47 }
 0xf66   :  { %v1625_v6 = vmul.f32 %v1623_v62, %v1619_v1 }
 0xf67   :  { %v1624_v8 = vmul.f32 %v1623_v62, %v1618_v2 }
 0xf68   :  { %v1631_v13 = vadd.f32 %v1629_v3, %v1625_v6 }
 0xf69   :  { %v1630_v12 = vadd.f32 %v1629_v3, %v1624_v8 }
 0xf6b   :  { %2066 = vmatprep.mubr.msk.f32.mxu0 %vm107_vm0, %v1630_v12 }
 0xf6c   :  { %2067 = vmatmul.mubr.msk.f32.vlgmr.msra.gmra.mrb[24].mxu0 %vm107_vm0, %v1631_v13 }
0x103f   :  { %v2068_v10 = vpop.f32.mrb[24].mxu0 }
0x1040   :  { %v1714_v18 = vadd.f32 %v2068_v10, %v1797_v14  ;;  %v1708_v19 = vpop.f32.mrb[25].mxu0 }
0x1041   :  { %v1709_v21 = vadd.f32 %v1797_v14, %v1708_v19 }
0x1042   :  { %1718 = vst [vmem:[#allocation2 + $0x8] sm:$0xff] %v1714_v18 }
0x1043   :  { %1717 = vst [vmem:[#allocation2] sm:$0xff] %v1709_v21 }
0x1044   :  { %2294 = shalt.err (!%p2291_p4)
}
0x1045   :  { %s2295_s9 = scalar_lea.hbm %s2836_s10, 256 }
0x1046   :  { %p2296_p5 = scmp.ne.s32.totalorder %s2836_s10, %s2295_s9  ;;  %p2299_p6 = scmp.lt.u32.totalorder %s2295_s9, %s2836_s10 }
0x1048   :  { %p2301_p7 = pnand %p2299_p6, %p2296_p5 }
0x104a   :  { %2304 = shalt.err (!%p2301_p7)
}
0x104b   :  { %s2310_s12 = smov 128   ;;  %s2311_s3 = smov 8  }
0x104c   :  { %1730 = dma.vmem_to_hbm [thread:$0]  %s1725_s25, 256, %s2836_s10, [#allocation3], %s2310_s12, %s2310_s12, %s2311_s3  }
0x104d   :  { %2305 = dma.done.wait [#allocation3], 256  }
0x104e   :  { %2306 = vsyncadd [#allocation3], 4294967040 }
0x104f   :  { %1734 = vsyncpa [#allocation3], 1 }

</bundles_post_ra>
